<compile_context>
chip_gen: v6e
topology: v6e:2x2x1
jax: 0.10.0
libtpu: 0.0.40
codegen_flags: <defaults>
</compile_context>

<pallas_src>
import math
import functools

import jax
import jax.numpy as jnp
from jax.experimental import pallas as pl
from jax.experimental.pallas import tpu as pltpu


def _matmul_nt(a, b):
    """a @ b.T with f32 accumulation on the MXU (operands usually bf16)."""
    return jax.lax.dot_general(
        a, b, (((1,), (1,)), ((), ())), preferred_element_type=jnp.float32
    )


def _layer_norm(x, g, b, eps=1e-6):
    # eps=1e-6 matches the module spec: LayerNorm(d_model, eps=1e-06).
    mu = jnp.mean(x, axis=-1, keepdims=True)
    var = jnp.mean((x - mu) ** 2, axis=-1, keepdims=True)
    return (x - mu) * jax.lax.rsqrt(var + eps) * g + b


def _split_heads(x2, nhead, dh, bt, l):
    """(bt*l, nhead*dh) -> (nhead*bt, l, dh), group index g = h*bt + b."""
    x3 = x2.reshape(bt, l, nhead * dh)
    # Concatenation along the (untiled) leading axis only.
    return jnp.concatenate(
        [x3[:, :, h * dh:(h + 1) * dh] for h in range(nhead)], axis=0
    )


def _attention(q2, k2, v2, wo, bo, nhead, bt, lq, lk, ctx_scratch, want_weights):
    """Head-batched scaled-dot-product attention + single fused out-proj.

    q2/k2/v2: (bt*l, E) f32 post-projection activations.
    wo: (E, E) bf16, bo: (1, E) f32.  ctx_scratch: VMEM (bt*lq, E) f32.
    """
    e = q2.shape[-1]
    dh = e // nhead
    scale = 1.0 / math.sqrt(dh)

    qh = _split_heads((q2 * scale).astype(jnp.bfloat16), nhead, dh, bt, lq)
    kh = _split_heads(k2.astype(jnp.bfloat16), nhead, dh, bt, lk)
    vh = _split_heads(v2.astype(jnp.bfloat16), nhead, dh, bt, lk)

    # One batched MXU matmul for all (head, batch) pairs.
    s = jnp.einsum("gqd,gkd->gqk", qh, kh, preferred_element_type=jnp.float32)
    s = s - jnp.max(s, axis=-1, keepdims=True)
    p = jnp.exp(s)
    # EUP reciprocal instead of a VPU divide.
    p = p * pl.reciprocal(jnp.sum(p, axis=-1, keepdims=True), approx=True)

    ctx = jnp.einsum("gqk,gkd->gqd", p.astype(jnp.bfloat16), vh,
                     preferred_element_type=jnp.float32)

    # Merge heads back to (bt*lq, E) through the VMEM scratch (static lane
    # slices), then ONE output projection with full-E contraction on the MXU.
    for h in range(nhead):
        ctx_scratch[:, h * dh:(h + 1) * dh] = (
            ctx[h * bt:(h + 1) * bt].reshape(bt * lq, dh)
        )
    out2 = _matmul_nt(ctx_scratch[...].astype(jnp.bfloat16), wo) + bo

    if want_weights:
        # Head-averaged attention weights (torch MHA average_attn_weights=True).
        attn = sum(p[h * bt:(h + 1) * bt] for h in range(nhead)) * (1.0 / nhead)
    else:
        attn = None
    return out2, attn


def _decoder_layer_kernel(
    nhead, return_attn,
    tgt_ref, mem_ref,
    wqkv_s_ref, bqkv_s_ref, wo_s_ref, bo_s_ref,
    wq_c_ref, bq_c_ref, wkv_c_ref, bkv_c_ref, wo_c_ref, bo_c_ref,
    w1_ref, b1_ref, w2_ref, b2_ref,
    g1_ref, be1_ref, g2_ref, be2_ref, g3_ref, be3_ref,
    out_ref, *rest,
):
    ctx_scratch = rest[-1]
    bt, lt, e = tgt_ref.shape
    ls = mem_ref.shape[1]

    x = tgt_ref[...].astype(jnp.float32).reshape(bt * lt, e)    # (Nt, E) f32
    mem = mem_ref[...].astype(jnp.float32).reshape(bt * ls, e)  # (Ns, E) f32

    # ---- self-attention block (post-norm) ----
    # Single fused QKV projection: (Nt, E) @ (3E, E)^T in bf16 on the MXU.
    qkv = _matmul_nt(x.astype(jnp.bfloat16), wqkv_s_ref[...]) + bqkv_s_ref[...]
    sa_out, sa_w = _attention(
        qkv[:, :e], qkv[:, e:2 * e], qkv[:, 2 * e:],
        wo_s_ref[...], bo_s_ref[...], nhead, bt, lt, lt,
        ctx_scratch, return_attn)
    x = _layer_norm(x + sa_out, g1_ref[...], be1_ref[...])

    # ---- cross-attention block ----
    q2 = _matmul_nt(x.astype(jnp.bfloat16), wq_c_ref[...]) + bq_c_ref[...]
    kv = _matmul_nt(mem.astype(jnp.bfloat16), wkv_c_ref[...]) + bkv_c_ref[...]
    ca_out, ca_w = _attention(
        q2, kv[:, :e], kv[:, e:],
        wo_c_ref[...], bo_c_ref[...], nhead, bt, lt, ls,
        ctx_scratch, return_attn)
    x = _layer_norm(x + ca_out, g2_ref[...], be2_ref[...])

    # ---- positionwise feed-forward (Linear -> ReLU -> Linear) ----
    # TODO(synk): for very large Lt / d_ffn, also tile over the row dimension so
    # the (Nt, d_ffn) intermediate never has to live whole in VMEM (v7x 64 MiB).
    hidden = jnp.maximum(
        _matmul_nt(x.astype(jnp.bfloat16), w1_ref[...]) + b1_ref[...], 0.0)
    ff = _matmul_nt(hidden.astype(jnp.bfloat16), w2_ref[...]) + b2_ref[...]
    x = _layer_norm(x + ff, g3_ref[...], be3_ref[...])

    out_ref[...] = x.reshape(bt, lt, e).astype(out_ref.dtype)
    if return_attn:
        self_attn_ref, cross_attn_ref = rest[0], rest[1]
        self_attn_ref[...] = sa_w.astype(self_attn_ref.dtype)
        cross_attn_ref[...] = ca_w.astype(cross_attn_ref.dtype)


def transformer_decoder_layer(tgt, memory, params, nhead, *,
                              return_attn=True, max_bt=8):
    B, Lt, E = tgt.shape
    _, Ls, _ = memory.shape
    d_ffn = params["w1"].shape[0]

    # Process several batch elements per grid step (amortize per-step overhead).
    bt = max(d for d in range(1, min(B, max_bt) + 1) if B % d == 0)
    grid = (B // bt,)

    # Cast matmul weights to bf16 once here (halves weight DMA/VMEM); keep
    # biases and LayerNorm params in f32.  Pre-split the cross-attn in_proj so
    # the kernel never slices weight rows.
    cast = lambda w: w.astype(jnp.bfloat16)
    wqkv_s, wo_s = cast(params["wqkv_s"]), cast(params["wo_s"])
    wq_c, wkv_c = cast(params["wqkv_c"][:E]), cast(params["wqkv_c"][E:])
    bq_c, bkv_c = params["bqkv_c"][:, :E], params["bqkv_c"][:, E:]
    wo_c = cast(params["wo_c"])
    w1, w2 = cast(params["w1"]), cast(params["w2"])

    # TODO(synk): weights are grid-invariant; single-buffering them
    # (pipeline_mode=pl.Buffered(1)) would halve weight VMEM on v7x.
    def rep(shape):
        nd = len(shape)
        return pl.BlockSpec(shape, lambda b, _nd=nd: (0,) * _nd)

    in_specs = [
        pl.BlockSpec((bt, Lt, E), lambda b: (b, 0, 0)),   # tgt
        pl.BlockSpec((bt, Ls, E), lambda b: (b, 0, 0)),   # memory
        rep((3 * E, E)), rep((1, 3 * E)), rep((E, E)), rep((1, E)),           # self
        rep((E, E)), rep((1, E)), rep((2 * E, E)), rep((1, 2 * E)),           # cross qkv
        rep((E, E)), rep((1, E)),                                             # cross out
        rep((d_ffn, E)), rep((1, d_ffn)), rep((E, d_ffn)), rep((1, E)),       # ffn
        rep((1, E)), rep((1, E)), rep((1, E)), rep((1, E)), rep((1, E)), rep((1, E)),
    ]
    out_specs = [pl.BlockSpec((bt, Lt, E), lambda b: (b, 0, 0))]
    out_shape = [jax.ShapeDtypeStruct((B, Lt, E), tgt.dtype)]
    if return_attn:
        # NOTE: attention-weight outputs are lane-sparse when Lt/Ls < 128; pass
        # return_attn=False to skip them entirely when they are not consumed.
        out_specs += [pl.BlockSpec((bt, Lt, Lt), lambda b: (b, 0, 0)),
                      pl.BlockSpec((bt, Lt, Ls), lambda b: (b, 0, 0))]
        out_shape += [jax.ShapeDtypeStruct((B, Lt, Lt), jnp.float32),
                      jax.ShapeDtypeStruct((B, Lt, Ls), jnp.float32)]

    kernel = functools.partial(_decoder_layer_kernel, nhead, return_attn)
    outs = pl.pallas_call(
        kernel,
        grid=grid,
        in_specs=in_specs,
        out_specs=tuple(out_specs),
        out_shape=tuple(out_shape),
        scratch_shapes=[pltpu.VMEM((bt * Lt, E), jnp.float32)],
        compiler_params=pltpu.CompilerParams(
            dimension_semantics=("parallel",),
            vmem_limit_bytes=48 * 1024 * 1024,
        ),
    )(
        tgt, memory,
        wqkv_s, params["bqkv_s"], wo_s, params["bo_s"],
        wq_c, bq_c, wkv_c, bkv_c, wo_c, params["bo_c"],
        w1, params["b1"], w2, params["b2"],
        params["g1"], params["be1"], params["g2"], params["be2"],
        params["g3"], params["be3"],
    )
    if return_attn:
        return outs
    out = outs[0] if isinstance(outs, (tuple, list)) else outs
    return out, None, None


def init_params(key, d_model, d_ffn):
    """Synthetic parameters (xavier-uniform weights, zero biases, LN gamma=1,
    beta=0), matching the torch module's parameter shapes."""
    ks = jax.random.split(key, 6)

    def xavier(k, shape):
        lim = math.sqrt(6.0 / (shape[0] + shape[1]))
        return jax.random.uniform(k, shape, jnp.float32, -lim, lim)

    z = lambda n: jnp.zeros((1, n), jnp.float32)
    o = lambda n: jnp.ones((1, n), jnp.float32)
    return {
        "wqkv_s": xavier(ks[0], (3 * d_model, d_model)), "bqkv_s": z(3 * d_model),
        "wo_s": xavier(ks[1], (d_model, d_model)), "bo_s": z(d_model),
        "wqkv_c": xavier(ks[2], (3 * d_model, d_model)), "bqkv_c": z(3 * d_model),
        "wo_c": xavier(ks[3], (d_model, d_model)), "bo_c": z(d_model),
        "w1": xavier(ks[4], (d_ffn, d_model)), "b1": z(d_ffn),
        "w2": xavier(ks[5], (d_model, d_ffn)), "b2": z(d_model),
        "g1": o(d_model), "be1": z(d_model),
        "g2": o(d_model), "be2": z(d_model),
        "g3": o(d_model), "be3": z(d_model),
    }


def _reference_forward(tgt, memory, params, nhead):
    """Pure-JAX f32 reference of the torch module (post-norm, no masks)."""
    def mha(q_in, kv_in, wqkv, bqkv, wo, bo):
        B, Lq, E = q_in.shape
        Lk = kv_in.shape[1]
        dh = E // nhead
        q = jnp.einsum("ble,fe->blf", q_in, wqkv[:E]) + bqkv[0, :E]
        k = jnp.einsum("ble,fe->blf", kv_in, wqkv[E:2 * E]) + bqkv[0, E:2 * E]
        v = jnp.einsum("ble,fe->blf", kv_in, wqkv[2 * E:]) + bqkv[0, 2 * E:]
        q = q.reshape(B, Lq, nhead, dh).transpose(0, 2, 1, 3) / math.sqrt(dh)
        k = k.reshape(B, Lk, nhead, dh).transpose(0, 2, 1, 3)
        v = v.reshape(B, Lk, nhead, dh).transpose(0, 2, 1, 3)
        p = jax.nn.softmax(jnp.einsum("bhqd,bhkd->bhqk", q, k), axis=-1)
        ctx = jnp.einsum("bhqk,bhkd->bhqd", p, v)
        ctx = ctx.transpose(0, 2, 1, 3).reshape(B, Lq, E)
        return jnp.einsum("ble,fe->blf", ctx, wo) + bo[0], p.mean(axis=1)

    def ln(x, g, b):
        mu = x.mean(-1, keepdims=True)
        var = ((x - mu) ** 2).mean(-1, keepdims=True)
        return (x - mu) * jax.lax.rsqrt(var + 1e-6) * g[0] + b[0]

    x = tgt
    sa, sw = mha(x, x, params["wqkv_s"], params["bqkv_s"], params["wo_s"], params["bo_s"])
    x = ln(x + sa, params["g1"], params["be1"])
    ca, cw = mha(x, memory, params["wqkv_c"], params["bqkv_c"], params["wo_c"], params["bo_c"])
    x = ln(x + ca, params["g2"], params["be2"])
    hidden = jax.nn.relu(jnp.einsum("ble,fe->blf", x, params["w1"]) + params["b1"][0])
    ff = jnp.einsum("ble,fe->blf", hidden, params["w2"]) + params["b2"][0]
    x = ln(x + ff, params["g3"], params["be3"])
    return x, sw, cw


if __name__ == "__main__":
    B, Lt, Ls, d_model, nhead, d_ffn = 2, 8, 16, 32, 4, 64
    key = jax.random.PRNGKey(0)
    k_tgt, k_mem, k_par = jax.random.split(key, 3)
    tgt = jax.random.normal(k_tgt, (B, Lt, d_model), jnp.float32)
    memory = jax.random.normal(k_mem, (B, Ls, d_model), jnp.float32)
    params = init_params(k_par, d_model, d_ffn)

    out, self_attn, cross_attn = transformer_decoder_layer(tgt, memory, params, nhead)
    jax.block_until_ready((out, self_attn, cross_attn))

    assert out.shape == (B, Lt, d_model)
    assert self_attn.shape == (B, Lt, Lt)
    assert cross_attn.shape == (B, Lt, Ls)
    assert bool(jnp.all(jnp.isfinite(out)))

    # Loose tolerance: kernel runs matmuls in bf16 and uses the EUP approximate
    # reciprocal; reference is pure f32.
    ref_out, ref_sa, ref_ca = _reference_forward(tgt, memory, params, nhead)
    err_out = float(jnp.max(jnp.abs(out - ref_out)))
    err_sa = float(jnp.max(jnp.abs(self_attn - ref_sa)))
    err_ca = float(jnp.max(jnp.abs(cross_attn - ref_ca)))
    assert err_out < 0.15 and err_sa < 0.05 and err_ca < 0.05, (err_out, err_sa, err_ca)

    print("KERNEL_OK")
</pallas_src>

<mosaic_0001>
module attributes {stable_mosaic.version = 11 : i64} {
  func.func @_decoder_layer_kernel(%arg0: i32, %arg1: memref<2x8x32xf32, #tpu.memory_space<vmem>>, %arg2: memref<2x16x32xf32, #tpu.memory_space<vmem>>, %arg3: memref<96x32xbf16, #tpu.memory_space<vmem>>, %arg4: memref<1x96xf32, #tpu.memory_space<vmem>>, %arg5: memref<32x32xbf16, #tpu.memory_space<vmem>>, %arg6: memref<1x32xf32, #tpu.memory_space<vmem>>, %arg7: memref<32x32xbf16, #tpu.memory_space<vmem>>, %arg8: memref<1x32xf32, #tpu.memory_space<vmem>>, %arg9: memref<64x32xbf16, #tpu.memory_space<vmem>>, %arg10: memref<1x64xf32, #tpu.memory_space<vmem>>, %arg11: memref<32x32xbf16, #tpu.memory_space<vmem>>, %arg12: memref<1x32xf32, #tpu.memory_space<vmem>>, %arg13: memref<64x32xbf16, #tpu.memory_space<vmem>>, %arg14: memref<1x64xf32, #tpu.memory_space<vmem>>, %arg15: memref<32x64xbf16, #tpu.memory_space<vmem>>, %arg16: memref<1x32xf32, #tpu.memory_space<vmem>>, %arg17: memref<1x32xf32, #tpu.memory_space<vmem>>, %arg18: memref<1x32xf32, #tpu.memory_space<vmem>>, %arg19: memref<1x32xf32, #tpu.memory_space<vmem>>, %arg20: memref<1x32xf32, #tpu.memory_space<vmem>>, %arg21: memref<1x32xf32, #tpu.memory_space<vmem>>, %arg22: memref<1x32xf32, #tpu.memory_space<vmem>>, %arg23: memref<2x8x32xf32, #tpu.memory_space<vmem>>, %arg24: memref<2x8x8xf32, #tpu.memory_space<vmem>>, %arg25: memref<2x8x16xf32, #tpu.memory_space<vmem>>, %arg26: memref<16x32xf32, #tpu.memory_space<vmem>>) attributes {dimension_semantics = [#tpu.dimension_semantics<parallel>], iteration_bounds = array<i64: 1>, scalar_prefetch = 0 : i64, scratch_operands = 1 : i64, tpu.core_type = #tpu.core_type<tc>, window_params = [{transform_indices = @transform_0, window_bounds = array<i64: 2, 8, 32>}, {transform_indices = @transform_1, window_bounds = array<i64: 2, 16, 32>}, {pipeline_mode = #tpu.pipeline_mode<synchronous>, transform_indices = @transform_2, window_bounds = array<i64: 96, 32>}, {pipeline_mode = #tpu.pipeline_mode<synchronous>, transform_indices = @transform_3, window_bounds = array<i64: 1, 96>}, {pipeline_mode = #tpu.pipeline_mode<synchronous>, transform_indices = @transform_4, window_bounds = array<i64: 32, 32>}, {pipeline_mode = #tpu.pipeline_mode<synchronous>, transform_indices = @transform_5, window_bounds = array<i64: 1, 32>}, {pipeline_mode = #tpu.pipeline_mode<synchronous>, transform_indices = @transform_6, window_bounds = array<i64: 32, 32>}, {pipeline_mode = #tpu.pipeline_mode<synchronous>, transform_indices = @transform_7, window_bounds = array<i64: 1, 32>}, {pipeline_mode = #tpu.pipeline_mode<synchronous>, transform_indices = @transform_8, window_bounds = array<i64: 64, 32>}, {pipeline_mode = #tpu.pipeline_mode<synchronous>, transform_indices = @transform_9, window_bounds = array<i64: 1, 64>}, {pipeline_mode = #tpu.pipeline_mode<synchronous>, transform_indices = @transform_10, window_bounds = array<i64: 32, 32>}, {pipeline_mode = #tpu.pipeline_mode<synchronous>, transform_indices = @transform_11, window_bounds = array<i64: 1, 32>}, {pipeline_mode = #tpu.pipeline_mode<synchronous>, transform_indices = @transform_12, window_bounds = array<i64: 64, 32>}, {pipeline_mode = #tpu.pipeline_mode<synchronous>, transform_indices = @transform_13, window_bounds = array<i64: 1, 64>}, {pipeline_mode = #tpu.pipeline_mode<synchronous>, transform_indices = @transform_14, window_bounds = array<i64: 32, 64>}, {pipeline_mode = #tpu.pipeline_mode<synchronous>, transform_indices = @transform_15, window_bounds = array<i64: 1, 32>}, {pipeline_mode = #tpu.pipeline_mode<synchronous>, transform_indices = @transform_16, window_bounds = array<i64: 1, 32>}, {pipeline_mode = #tpu.pipeline_mode<synchronous>, transform_indices = @transform_17, window_bounds = array<i64: 1, 32>}, {pipeline_mode = #tpu.pipeline_mode<synchronous>, transform_indices = @transform_18, window_bounds = array<i64: 1, 32>}, {pipeline_mode = #tpu.pipeline_mode<synchronous>, transform_indices = @transform_19, window_bounds = array<i64: 1, 32>}, {pipeline_mode = #tpu.pipeline_mode<synchronous>, transform_indices = @transform_20, window_bounds = array<i64: 1, 32>}, {pipeline_mode = #tpu.pipeline_mode<synchronous>, transform_indices = @transform_21, window_bounds = array<i64: 1, 32>}, {transform_indices = @transform_22, window_bounds = array<i64: 2, 8, 32>}, {transform_indices = @transform_23, window_bounds = array<i64: 2, 8, 8>}, {transform_indices = @transform_24, window_bounds = array<i64: 2, 8, 16>}]} {
    %c0 = arith.constant 0 : index
    %c0_0 = arith.constant 0 : index
    %c0_1 = arith.constant 0 : index
    %0 = vector.load %arg1[%c0, %c0_0, %c0_1] : memref<2x8x32xf32, #tpu.memory_space<vmem>>, vector<2x8x32xf32>
    %1 = vector.shape_cast %0 : vector<2x8x32xf32> to vector<16x32xf32>
    %c0_2 = arith.constant 0 : index
    %c0_3 = arith.constant 0 : index
    %c0_4 = arith.constant 0 : index
    %2 = vector.load %arg2[%c0_2, %c0_3, %c0_4] : memref<2x16x32xf32, #tpu.memory_space<vmem>>, vector<2x16x32xf32>
    %3 = vector.shape_cast %2 : vector<2x16x32xf32> to vector<32x32xf32>
    %4 = arith.truncf %1 : vector<16x32xf32> to vector<16x32xbf16>
    %c0_5 = arith.constant 0 : index
    %c0_6 = arith.constant 0 : index
    %5 = vector.load %arg3[%c0_5, %c0_6] : memref<96x32xbf16, #tpu.memory_space<vmem>>, vector<96x32xbf16>
    %cst = arith.constant dense<0.000000e+00> : vector<16x96xf32>
    %6 = tpu.matmul %4, %5, %cst {dimension_numbers = #tpu.dot_dimension_numbers<[1], [1], [0], [0], [0, 0, 1, 0], [], []>} : vector<16x32xbf16>, vector<96x32xbf16>, vector<16x96xf32> -> vector<16x96xf32>
    %c0_7 = arith.constant 0 : index
    %c0_8 = arith.constant 0 : index
    %7 = vector.load %arg4[%c0_7, %c0_8] : memref<1x96xf32, #tpu.memory_space<vmem>>, vector<1x96xf32>
    %8 = vector.broadcast %7 : vector<1x96xf32> to vector<16x96xf32>
    %9 = arith.addf %6, %8 : vector<16x96xf32>
    %10 = vector.extract_strided_slice %9 {offsets = [0, 0], sizes = [16, 32], strides = [1, 1]} : vector<16x96xf32> to vector<16x32xf32>
    %11 = vector.extract_strided_slice %9 {offsets = [0, 32], sizes = [16, 32], strides = [1, 1]} : vector<16x96xf32> to vector<16x32xf32>
    %12 = vector.extract_strided_slice %9 {offsets = [0, 64], sizes = [16, 32], strides = [1, 1]} : vector<16x96xf32> to vector<16x32xf32>
    %c0_9 = arith.constant 0 : index
    %c0_10 = arith.constant 0 : index
    %13 = vector.load %arg5[%c0_9, %c0_10] : memref<32x32xbf16, #tpu.memory_space<vmem>>, vector<32x32xbf16>
    %c0_11 = arith.constant 0 : index
    %c0_12 = arith.constant 0 : index
    %14 = vector.load %arg6[%c0_11, %c0_12] : memref<1x32xf32, #tpu.memory_space<vmem>>, vector<1x32xf32>
    %cst_13 = arith.constant 0.353553385 : f32
    %15 = vector.broadcast %cst_13 : f32 to vector<16x32xf32>
    %16 = arith.mulf %10, %15 : vector<16x32xf32>
    %17 = arith.truncf %16 : vector<16x32xf32> to vector<16x32xbf16>
    %18 = vector.shape_cast %17 : vector<16x32xbf16> to vector<2x8x32xbf16>
    %19 = vector.extract_strided_slice %18 {offsets = [0, 0, 0], sizes = [2, 8, 8], strides = [1, 1, 1]} : vector<2x8x32xbf16> to vector<2x8x8xbf16>
    %20 = vector.extract_strided_slice %18 {offsets = [0, 0, 8], sizes = [2, 8, 8], strides = [1, 1, 1]} : vector<2x8x32xbf16> to vector<2x8x8xbf16>
    %21 = vector.extract_strided_slice %18 {offsets = [0, 0, 16], sizes = [2, 8, 8], strides = [1, 1, 1]} : vector<2x8x32xbf16> to vector<2x8x8xbf16>
    %22 = vector.extract_strided_slice %18 {offsets = [0, 0, 24], sizes = [2, 8, 8], strides = [1, 1, 1]} : vector<2x8x32xbf16> to vector<2x8x8xbf16>
    %23 = tpu.concatenate %19, %20, %21, %22 in 0 : vector<2x8x8xbf16>, vector<2x8x8xbf16>, vector<2x8x8xbf16>, vector<2x8x8xbf16> -> vector<8x8x8xbf16>
    %24 = arith.truncf %11 : vector<16x32xf32> to vector<16x32xbf16>
    %25 = vector.shape_cast %24 : vector<16x32xbf16> to vector<2x8x32xbf16>
    %26 = vector.extract_strided_slice %25 {offsets = [0, 0, 0], sizes = [2, 8, 8], strides = [1, 1, 1]} : vector<2x8x32xbf16> to vector<2x8x8xbf16>
    %27 = vector.extract_strided_slice %25 {offsets = [0, 0, 8], sizes = [2, 8, 8], strides = [1, 1, 1]} : vector<2x8x32xbf16> to vector<2x8x8xbf16>
    %28 = vector.extract_strided_slice %25 {offsets = [0, 0, 16], sizes = [2, 8, 8], strides = [1, 1, 1]} : vector<2x8x32xbf16> to vector<2x8x8xbf16>
    %29 = vector.extract_strided_slice %25 {offsets = [0, 0, 24], sizes = [2, 8, 8], strides = [1, 1, 1]} : vector<2x8x32xbf16> to vector<2x8x8xbf16>
    %30 = tpu.concatenate %26, %27, %28, %29 in 0 : vector<2x8x8xbf16>, vector<2x8x8xbf16>, vector<2x8x8xbf16>, vector<2x8x8xbf16> -> vector<8x8x8xbf16>
    %31 = arith.truncf %12 : vector<16x32xf32> to vector<16x32xbf16>
    %32 = vector.shape_cast %31 : vector<16x32xbf16> to vector<2x8x32xbf16>
    %33 = vector.extract_strided_slice %32 {offsets = [0, 0, 0], sizes = [2, 8, 8], strides = [1, 1, 1]} : vector<2x8x32xbf16> to vector<2x8x8xbf16>
    %34 = vector.extract_strided_slice %32 {offsets = [0, 0, 8], sizes = [2, 8, 8], strides = [1, 1, 1]} : vector<2x8x32xbf16> to vector<2x8x8xbf16>
    %35 = vector.extract_strided_slice %32 {offsets = [0, 0, 16], sizes = [2, 8, 8], strides = [1, 1, 1]} : vector<2x8x32xbf16> to vector<2x8x8xbf16>
    %36 = vector.extract_strided_slice %32 {offsets = [0, 0, 24], sizes = [2, 8, 8], strides = [1, 1, 1]} : vector<2x8x32xbf16> to vector<2x8x8xbf16>
    %37 = tpu.concatenate %33, %34, %35, %36 in 0 : vector<2x8x8xbf16>, vector<2x8x8xbf16>, vector<2x8x8xbf16>, vector<2x8x8xbf16> -> vector<8x8x8xbf16>
    "tpu.trace_start"() <{level = 10 : i32, message = "gqd,gkd->gqk"}> : () -> ()
    %cst_14 = arith.constant dense<0.000000e+00> : vector<8x8x8xf32>
    %38 = tpu.matmul %23, %30, %cst_14 {dimension_numbers = #tpu.dot_dimension_numbers<[2], [2], [1], [1], [0, 0, 0, 1, 1, 1], [0], [0]>} : vector<8x8x8xbf16>, vector<8x8x8xbf16>, vector<8x8x8xf32> -> vector<8x8x8xf32>
    "tpu.trace_stop"() : () -> ()
    %cst_15 = arith.constant dense<0xFF800000> : vector<8x8xf32>
    %39 = vector.multi_reduction <maximumf>, %38, %cst_15 [2] : vector<8x8x8xf32> to vector<8x8xf32>
    %40 = vector.shape_cast %39 : vector<8x8xf32> to vector<8x8x1xf32>
    %41 = vector.broadcast %40 : vector<8x8x1xf32> to vector<8x8x8xf32>
    %42 = arith.subf %38, %41 : vector<8x8x8xf32>
    %43 = math.exp %42 : vector<8x8x8xf32>
    %cst_16 = arith.constant dense<0.000000e+00> : vector<8x8xf32>
    %44 = vector.multi_reduction <add>, %43, %cst_16 [2] : vector<8x8x8xf32> to vector<8x8xf32>
    %45 = vector.shape_cast %44 : vector<8x8xf32> to vector<8x8x1xf32>
    %46 = tpu.reciprocal %45 {approx = true} : vector<8x8x1xf32> -> vector<8x8x1xf32>
    %47 = vector.broadcast %46 : vector<8x8x1xf32> to vector<8x8x8xf32>
    %48 = arith.mulf %43, %47 : vector<8x8x8xf32>
    %49 = arith.truncf %48 : vector<8x8x8xf32> to vector<8x8x8xbf16>
    "tpu.trace_start"() <{level = 10 : i32, message = "gqk,gkd->gqd"}> : () -> ()
    %cst_17 = arith.constant dense<0.000000e+00> : vector<8x8x8xf32>
    %50 = tpu.matmul %49, %37, %cst_17 {dimension_numbers = #tpu.dot_dimension_numbers<[2], [1], [1], [2], [0, 0, 0, 1, 1, 2], [0], [0]>} : vector<8x8x8xbf16>, vector<8x8x8xbf16>, vector<8x8x8xf32> -> vector<8x8x8xf32>
    "tpu.trace_stop"() : () -> ()
    %51 = vector.extract_strided_slice %50 {offsets = [0, 0, 0], sizes = [2, 8, 8], strides = [1, 1, 1]} : vector<8x8x8xf32> to vector<2x8x8xf32>
    %52 = vector.shape_cast %51 : vector<2x8x8xf32> to vector<16x8xf32>
    %c0_18 = arith.constant 0 : index
    %c0_19 = arith.constant 0 : index
    %53 = vector.load %arg26[%c0_18, %c0_19] : memref<16x32xf32, #tpu.memory_space<vmem>>, vector<16x8xf32>
    tpu.vector_store %arg26[%c0_18, %c0_19], %52 {strides = array<i32>} : memref<16x32xf32, #tpu.memory_space<vmem>>, vector<16x8xf32>,
    %54 = vector.extract_strided_slice %50 {offsets = [2, 0, 0], sizes = [2, 8, 8], strides = [1, 1, 1]} : vector<8x8x8xf32> to vector<2x8x8xf32>
    %55 = vector.shape_cast %54 : vector<2x8x8xf32> to vector<16x8xf32>
    %c0_20 = arith.constant 0 : index
    %c8 = arith.constant 8 : index
    %56 = vector.load %arg26[%c0_20, %c8] : memref<16x32xf32, #tpu.memory_space<vmem>>, vector<16x8xf32>
    tpu.vector_store %arg26[%c0_20, %c8], %55 {strides = array<i32>} : memref<16x32xf32, #tpu.memory_space<vmem>>, vector<16x8xf32>,
    %57 = vector.extract_strided_slice %50 {offsets = [4, 0, 0], sizes = [2, 8, 8], strides = [1, 1, 1]} : vector<8x8x8xf32> to vector<2x8x8xf32>
    %58 = vector.shape_cast %57 : vector<2x8x8xf32> to vector<16x8xf32>
    %c0_21 = arith.constant 0 : index
    %c16 = arith.constant 16 : index
    %59 = vector.load %arg26[%c0_21, %c16] : memref<16x32xf32, #tpu.memory_space<vmem>>, vector<16x8xf32>
    tpu.vector_store %arg26[%c0_21, %c16], %58 {strides = array<i32>} : memref<16x32xf32, #tpu.memory_space<vmem>>, vector<16x8xf32>,
    %60 = vector.extract_strided_slice %50 {offsets = [6, 0, 0], sizes = [2, 8, 8], strides = [1, 1, 1]} : vector<8x8x8xf32> to vector<2x8x8xf32>
    %61 = vector.shape_cast %60 : vector<2x8x8xf32> to vector<16x8xf32>
    %c0_22 = arith.constant 0 : index
    %c24 = arith.constant 24 : index
    %62 = vector.load %arg26[%c0_22, %c24] : memref<16x32xf32, #tpu.memory_space<vmem>>, vector<16x8xf32>
    tpu.vector_store %arg26[%c0_22, %c24], %61 {strides = array<i32>} : memref<16x32xf32, #tpu.memory_space<vmem>>, vector<16x8xf32>,
    %c0_23 = arith.constant 0 : index
    %c0_24 = arith.constant 0 : index
    %63 = vector.load %arg26[%c0_23, %c0_24] : memref<16x32xf32, #tpu.memory_space<vmem>>, vector<16x32xf32>
    %64 = arith.truncf %63 : vector<16x32xf32> to vector<16x32xbf16>
    %cst_25 = arith.constant dense<0.000000e+00> : vector<16x32xf32>
    %65 = tpu.matmul %64, %13, %cst_25 {dimension_numbers = #tpu.dot_dimension_numbers<[1], [1], [0], [0], [0, 0, 1, 0], [], []>} : vector<16x32xbf16>, vector<32x32xbf16>, vector<16x32xf32> -> vector<16x32xf32>
    %66 = vector.broadcast %14 : vector<1x32xf32> to vector<16x32xf32>
    %67 = arith.addf %65, %66 : vector<16x32xf32>
    %68 = vector.extract_strided_slice %48 {offsets = [0, 0, 0], sizes = [2, 8, 8], strides = [1, 1, 1]} : vector<8x8x8xf32> to vector<2x8x8xf32>
    %cst_26 = arith.constant 0.000000e+00 : f32
    %69 = vector.broadcast %cst_26 : f32 to vector<2x8x8xf32>
    %70 = arith.addf %69, %68 : vector<2x8x8xf32>
    %71 = vector.extract_strided_slice %48 {offsets = [2, 0, 0], sizes = [2, 8, 8], strides = [1, 1, 1]} : vector<8x8x8xf32> to vector<2x8x8xf32>
    %72 = arith.addf %70, %71 : vector<2x8x8xf32>
    %73 = vector.extract_strided_slice %48 {offsets = [4, 0, 0], sizes = [2, 8, 8], strides = [1, 1, 1]} : vector<8x8x8xf32> to vector<2x8x8xf32>
    %74 = arith.addf %72, %73 : vector<2x8x8xf32>
    %75 = vector.extract_strided_slice %48 {offsets = [6, 0, 0], sizes = [2, 8, 8], strides = [1, 1, 1]} : vector<8x8x8xf32> to vector<2x8x8xf32>
    %76 = arith.addf %74, %75 : vector<2x8x8xf32>
    %cst_27 = arith.constant 2.500000e-01 : f32
    %77 = vector.broadcast %cst_27 : f32 to vector<2x8x8xf32>
    %78 = arith.mulf %76, %77 : vector<2x8x8xf32>
    %79 = arith.addf %1, %67 : vector<16x32xf32>
    %c0_28 = arith.constant 0 : index
    %c0_29 = arith.constant 0 : index
    %80 = vector.load %arg17[%c0_28, %c0_29] : memref<1x32xf32, #tpu.memory_space<vmem>>, vector<1x32xf32>
    %c0_30 = arith.constant 0 : index
    %c0_31 = arith.constant 0 : index
    %81 = vector.load %arg18[%c0_30, %c0_31] : memref<1x32xf32, #tpu.memory_space<vmem>>, vector<1x32xf32>
    %cst_32 = arith.constant dense<0.000000e+00> : vector<16xf32>
    %82 = vector.multi_reduction <add>, %79, %cst_32 [1] : vector<16x32xf32> to vector<16xf32>
    %83 = vector.shape_cast %82 : vector<16xf32> to vector<16x1xf32>
    %cst_33 = arith.constant 3.200000e+01 : f32
    %84 = vector.broadcast %cst_33 : f32 to vector<16x1xf32>
    %85 = arith.divf %83, %84 : vector<16x1xf32>
    %86 = vector.broadcast %85 : vector<16x1xf32> to vector<16x32xf32>
    %87 = arith.subf %79, %86 : vector<16x32xf32>
    %88 = arith.mulf %87, %87 : vector<16x32xf32>
    %cst_34 = arith.constant dense<0.000000e+00> : vector<16xf32>
    %89 = vector.multi_reduction <add>, %88, %cst_34 [1] : vector<16x32xf32> to vector<16xf32>
    %90 = vector.shape_cast %89 : vector<16xf32> to vector<16x1xf32>
    %cst_35 = arith.constant 3.200000e+01 : f32
    %91 = vector.broadcast %cst_35 : f32 to vector<16x1xf32>
    %92 = arith.divf %90, %91 : vector<16x1xf32>
    %93 = vector.broadcast %85 : vector<16x1xf32> to vector<16x32xf32>
    %94 = arith.subf %79, %93 : vector<16x32xf32>
    %cst_36 = arith.constant 9.99999997E-7 : f32
    %95 = vector.broadcast %cst_36 : f32 to vector<16x1xf32>
    %96 = arith.addf %92, %95 : vector<16x1xf32>
    %97 = math.rsqrt %96 : vector<16x1xf32>
    %98 = vector.broadcast %97 : vector<16x1xf32> to vector<16x32xf32>
    %99 = arith.mulf %94, %98 : vector<16x32xf32>
    %100 = vector.broadcast %80 : vector<1x32xf32> to vector<16x32xf32>
    %101 = arith.mulf %99, %100 : vector<16x32xf32>
    %102 = vector.broadcast %81 : vector<1x32xf32> to vector<16x32xf32>
    %103 = arith.addf %101, %102 : vector<16x32xf32>
    %104 = arith.truncf %103 : vector<16x32xf32> to vector<16x32xbf16>
    %c0_37 = arith.constant 0 : index
    %c0_38 = arith.constant 0 : index
    %105 = vector.load %arg7[%c0_37, %c0_38] : memref<32x32xbf16, #tpu.memory_space<vmem>>, vector<32x32xbf16>
    %cst_39 = arith.constant dense<0.000000e+00> : vector<16x32xf32>
    %106 = tpu.matmul %104, %105, %cst_39 {dimension_numbers = #tpu.dot_dimension_numbers<[1], [1], [0], [0], [0, 0, 1, 0], [], []>} : vector<16x32xbf16>, vector<32x32xbf16>, vector<16x32xf32> -> vector<16x32xf32>
    %c0_40 = arith.constant 0 : index
    %c0_41 = arith.constant 0 : index
    %107 = vector.load %arg8[%c0_40, %c0_41] : memref<1x32xf32, #tpu.memory_space<vmem>>, vector<1x32xf32>
    %108 = vector.broadcast %107 : vector<1x32xf32> to vector<16x32xf32>
    %109 = arith.addf %106, %108 : vector<16x32xf32>
    %110 = arith.truncf %3 : vector<32x32xf32> to vector<32x32xbf16>
    %c0_42 = arith.constant 0 : index
    %c0_43 = arith.constant 0 : index
    %111 = vector.load %arg9[%c0_42, %c0_43] : memref<64x32xbf16, #tpu.memory_space<vmem>>, vector<64x32xbf16>
    %cst_44 = arith.constant dense<0.000000e+00> : vector<32x64xf32>
    %112 = tpu.matmul %110, %111, %cst_44 {dimension_numbers = #tpu.dot_dimension_numbers<[1], [1], [0], [0], [0, 0, 1, 0], [], []>} : vector<32x32xbf16>, vector<64x32xbf16>, vector<32x64xf32> -> vector<32x64xf32>
    %c0_45 = arith.constant 0 : index
    %c0_46 = arith.constant 0 : index
    %113 = vector.load %arg10[%c0_45, %c0_46] : memref<1x64xf32, #tpu.memory_space<vmem>>, vector<1x64xf32>
    %114 = vector.broadcast %113 : vector<1x64xf32> to vector<32x64xf32>
    %115 = arith.addf %112, %114 : vector<32x64xf32>
    %116 = vector.extract_strided_slice %115 {offsets = [0, 0], sizes = [32, 32], strides = [1, 1]} : vector<32x64xf32> to vector<32x32xf32>
    %117 = vector.extract_strided_slice %115 {offsets = [0, 32], sizes = [32, 32], strides = [1, 1]} : vector<32x64xf32> to vector<32x32xf32>
    %c0_47 = arith.constant 0 : index
    %c0_48 = arith.constant 0 : index
    %118 = vector.load %arg11[%c0_47, %c0_48] : memref<32x32xbf16, #tpu.memory_space<vmem>>, vector<32x32xbf16>
    %c0_49 = arith.constant 0 : index
    %c0_50 = arith.constant 0 : index
    %119 = vector.load %arg12[%c0_49, %c0_50] : memref<1x32xf32, #tpu.memory_space<vmem>>, vector<1x32xf32>
    %cst_51 = arith.constant 0.353553385 : f32
    %120 = vector.broadcast %cst_51 : f32 to vector<16x32xf32>
    %121 = arith.mulf %109, %120 : vector<16x32xf32>
    %122 = arith.truncf %121 : vector<16x32xf32> to vector<16x32xbf16>
    %123 = vector.shape_cast %122 : vector<16x32xbf16> to vector<2x8x32xbf16>
    %124 = vector.extract_strided_slice %123 {offsets = [0, 0, 0], sizes = [2, 8, 8], strides = [1, 1, 1]} : vector<2x8x32xbf16> to vector<2x8x8xbf16>
    %125 = vector.extract_strided_slice %123 {offsets = [0, 0, 8], sizes = [2, 8, 8], strides = [1, 1, 1]} : vector<2x8x32xbf16> to vector<2x8x8xbf16>
    %126 = vector.extract_strided_slice %123 {offsets = [0, 0, 16], sizes = [2, 8, 8], strides = [1, 1, 1]} : vector<2x8x32xbf16> to vector<2x8x8xbf16>
    %127 = vector.extract_strided_slice %123 {offsets = [0, 0, 24], sizes = [2, 8, 8], strides = [1, 1, 1]} : vector<2x8x32xbf16> to vector<2x8x8xbf16>
    %128 = tpu.concatenate %124, %125, %126, %127 in 0 : vector<2x8x8xbf16>, vector<2x8x8xbf16>, vector<2x8x8xbf16>, vector<2x8x8xbf16> -> vector<8x8x8xbf16>
    %129 = arith.truncf %116 : vector<32x32xf32> to vector<32x32xbf16>
    %130 = vector.shape_cast %129 : vector<32x32xbf16> to vector<2x16x32xbf16>
    %131 = vector.extract_strided_slice %130 {offsets = [0, 0, 0], sizes = [2, 16, 8], strides = [1, 1, 1]} : vector<2x16x32xbf16> to vector<2x16x8xbf16>
    %132 = vector.extract_strided_slice %130 {offsets = [0, 0, 8], sizes = [2, 16, 8], strides = [1, 1, 1]} : vector<2x16x32xbf16> to vector<2x16x8xbf16>
    %133 = vector.extract_strided_slice %130 {offsets = [0, 0, 16], sizes = [2, 16, 8], strides = [1, 1, 1]} : vector<2x16x32xbf16> to vector<2x16x8xbf16>
    %134 = vector.extract_strided_slice %130 {offsets = [0, 0, 24], sizes = [2, 16, 8], strides = [1, 1, 1]} : vector<2x16x32xbf16> to vector<2x16x8xbf16>
    %135 = tpu.concatenate %131, %132, %133, %134 in 0 : vector<2x16x8xbf16>, vector<2x16x8xbf16>, vector<2x16x8xbf16>, vector<2x16x8xbf16> -> vector<8x16x8xbf16>
    %136 = arith.truncf %117 : vector<32x32xf32> to vector<32x32xbf16>
    %137 = vector.shape_cast %136 : vector<32x32xbf16> to vector<2x16x32xbf16>
    %138 = vector.extract_strided_slice %137 {offsets = [0, 0, 0], sizes = [2, 16, 8], strides = [1, 1, 1]} : vector<2x16x32xbf16> to vector<2x16x8xbf16>
    %139 = vector.extract_strided_slice %137 {offsets = [0, 0, 8], sizes = [2, 16, 8], strides = [1, 1, 1]} : vector<2x16x32xbf16> to vector<2x16x8xbf16>
    %140 = vector.extract_strided_slice %137 {offsets = [0, 0, 16], sizes = [2, 16, 8], strides = [1, 1, 1]} : vector<2x16x32xbf16> to vector<2x16x8xbf16>
    %141 = vector.extract_strided_slice %137 {offsets = [0, 0, 24], sizes = [2, 16, 8], strides = [1, 1, 1]} : vector<2x16x32xbf16> to vector<2x16x8xbf16>
    %142 = tpu.concatenate %138, %139, %140, %141 in 0 : vector<2x16x8xbf16>, vector<2x16x8xbf16>, vector<2x16x8xbf16>, vector<2x16x8xbf16> -> vector<8x16x8xbf16>
    "tpu.trace_start"() <{level = 10 : i32, message = "gqd,gkd->gqk"}> : () -> ()
    %cst_52 = arith.constant dense<0.000000e+00> : vector<8x8x16xf32>
    %143 = tpu.matmul %128, %135, %cst_52 {dimension_numbers = #tpu.dot_dimension_numbers<[2], [2], [1], [1], [0, 0, 0, 1, 1, 1], [0], [0]>} : vector<8x8x8xbf16>, vector<8x16x8xbf16>, vector<8x8x16xf32> -> vector<8x8x16xf32>
    "tpu.trace_stop"() : () -> ()
    %cst_53 = arith.constant dense<0xFF800000> : vector<8x8xf32>
    %144 = vector.multi_reduction <maximumf>, %143, %cst_53 [2] : vector<8x8x16xf32> to vector<8x8xf32>
    %145 = vector.shape_cast %144 : vector<8x8xf32> to vector<8x8x1xf32>
    %146 = vector.broadcast %145 : vector<8x8x1xf32> to vector<8x8x16xf32>
    %147 = arith.subf %143, %146 : vector<8x8x16xf32>
    %148 = math.exp %147 : vector<8x8x16xf32>
    %cst_54 = arith.constant dense<0.000000e+00> : vector<8x8xf32>
    %149 = vector.multi_reduction <add>, %148, %cst_54 [2] : vector<8x8x16xf32> to vector<8x8xf32>
    %150 = vector.shape_cast %149 : vector<8x8xf32> to vector<8x8x1xf32>
    %151 = tpu.reciprocal %150 {approx = true} : vector<8x8x1xf32> -> vector<8x8x1xf32>
    %152 = vector.broadcast %151 : vector<8x8x1xf32> to vector<8x8x16xf32>
    %153 = arith.mulf %148, %152 : vector<8x8x16xf32>
    %154 = arith.truncf %153 : vector<8x8x16xf32> to vector<8x8x16xbf16>
    "tpu.trace_start"() <{level = 10 : i32, message = "gqk,gkd->gqd"}> : () -> ()
    %cst_55 = arith.constant dense<0.000000e+00> : vector<8x8x8xf32>
    %155 = tpu.matmul %154, %142, %cst_55 {dimension_numbers = #tpu.dot_dimension_numbers<[2], [1], [1], [2], [0, 0, 0, 1, 1, 2], [0], [0]>} : vector<8x8x16xbf16>, vector<8x16x8xbf16>, vector<8x8x8xf32> -> vector<8x8x8xf32>
    "tpu.trace_stop"() : () -> ()
    %156 = vector.extract_strided_slice %155 {offsets = [0, 0, 0], sizes = [2, 8, 8], strides = [1, 1, 1]} : vector<8x8x8xf32> to vector<2x8x8xf32>
    %157 = vector.shape_cast %156 : vector<2x8x8xf32> to vector<16x8xf32>
    %c0_56 = arith.constant 0 : index
    %c0_57 = arith.constant 0 : index
    %158 = vector.load %arg26[%c0_56, %c0_57] : memref<16x32xf32, #tpu.memory_space<vmem>>, vector<16x8xf32>
    tpu.vector_store %arg26[%c0_56, %c0_57], %157 {strides = array<i32>} : memref<16x32xf32, #tpu.memory_space<vmem>>, vector<16x8xf32>,
    %159 = vector.extract_strided_slice %155 {offsets = [2, 0, 0], sizes = [2, 8, 8], strides = [1, 1, 1]} : vector<8x8x8xf32> to vector<2x8x8xf32>
    %160 = vector.shape_cast %159 : vector<2x8x8xf32> to vector<16x8xf32>
    %c0_58 = arith.constant 0 : index
    %c8_59 = arith.constant 8 : index
    %161 = vector.load %arg26[%c0_58, %c8_59] : memref<16x32xf32, #tpu.memory_space<vmem>>, vector<16x8xf32>
    tpu.vector_store %arg26[%c0_58, %c8_59], %160 {strides = array<i32>} : memref<16x32xf32, #tpu.memory_space<vmem>>, vector<16x8xf32>,
    %162 = vector.extract_strided_slice %155 {offsets = [4, 0, 0], sizes = [2, 8, 8], strides = [1, 1, 1]} : vector<8x8x8xf32> to vector<2x8x8xf32>
    %163 = vector.shape_cast %162 : vector<2x8x8xf32> to vector<16x8xf32>
    %c0_60 = arith.constant 0 : index
    %c16_61 = arith.constant 16 : index
    %164 = vector.load %arg26[%c0_60, %c16_61] : memref<16x32xf32, #tpu.memory_space<vmem>>, vector<16x8xf32>
    tpu.vector_store %arg26[%c0_60, %c16_61], %163 {strides = array<i32>} : memref<16x32xf32, #tpu.memory_space<vmem>>, vector<16x8xf32>,
    %165 = vector.extract_strided_slice %155 {offsets = [6, 0, 0], sizes = [2, 8, 8], strides = [1, 1, 1]} : vector<8x8x8xf32> to vector<2x8x8xf32>
    %166 = vector.shape_cast %165 : vector<2x8x8xf32> to vector<16x8xf32>
    %c0_62 = arith.constant 0 : index
    %c24_63 = arith.constant 24 : index
    %167 = vector.load %arg26[%c0_62, %c24_63] : memref<16x32xf32, #tpu.memory_space<vmem>>, vector<16x8xf32>
    tpu.vector_store %arg26[%c0_62, %c24_63], %166 {strides = array<i32>} : memref<16x32xf32, #tpu.memory_space<vmem>>, vector<16x8xf32>,
    %c0_64 = arith.constant 0 : index
    %c0_65 = arith.constant 0 : index
    %168 = vector.load %arg26[%c0_64, %c0_65] : memref<16x32xf32, #tpu.memory_space<vmem>>, vector<16x32xf32>
    %169 = arith.truncf %168 : vector<16x32xf32> to vector<16x32xbf16>
    %cst_66 = arith.constant dense<0.000000e+00> : vector<16x32xf32>
    %170 = tpu.matmul %169, %118, %cst_66 {dimension_numbers = #tpu.dot_dimension_numbers<[1], [1], [0], [0], [0, 0, 1, 0], [], []>} : vector<16x32xbf16>, vector<32x32xbf16>, vector<16x32xf32> -> vector<16x32xf32>
    %171 = vector.broadcast %119 : vector<1x32xf32> to vector<16x32xf32>
    %172 = arith.addf %170, %171 : vector<16x32xf32>
    %173 = vector.extract_strided_slice %153 {offsets = [0, 0, 0], sizes = [2, 8, 16], strides = [1, 1, 1]} : vector<8x8x16xf32> to vector<2x8x16xf32>
    %cst_67 = arith.constant 0.000000e+00 : f32
    %174 = vector.broadcast %cst_67 : f32 to vector<2x8x16xf32>
    %175 = arith.addf %174, %173 : vector<2x8x16xf32>
    %176 = vector.extract_strided_slice %153 {offsets = [2, 0, 0], sizes = [2, 8, 16], strides = [1, 1, 1]} : vector<8x8x16xf32> to vector<2x8x16xf32>
    %177 = arith.addf %175, %176 : vector<2x8x16xf32>
    %178 = vector.extract_strided_slice %153 {offsets = [4, 0, 0], sizes = [2, 8, 16], strides = [1, 1, 1]} : vector<8x8x16xf32> to vector<2x8x16xf32>
    %179 = arith.addf %177, %178 : vector<2x8x16xf32>
    %180 = vector.extract_strided_slice %153 {offsets = [6, 0, 0], sizes = [2, 8, 16], strides = [1, 1, 1]} : vector<8x8x16xf32> to vector<2x8x16xf32>
    %181 = arith.addf %179, %180 : vector<2x8x16xf32>
    %cst_68 = arith.constant 2.500000e-01 : f32
    %182 = vector.broadcast %cst_68 : f32 to vector<2x8x16xf32>
    %183 = arith.mulf %181, %182 : vector<2x8x16xf32>
    %184 = arith.addf %103, %172 : vector<16x32xf32>
    %c0_69 = arith.constant 0 : index
    %c0_70 = arith.constant 0 : index
    %185 = vector.load %arg19[%c0_69, %c0_70] : memref<1x32xf32, #tpu.memory_space<vmem>>, vector<1x32xf32>
    %c0_71 = arith.constant 0 : index
    %c0_72 = arith.constant 0 : index
    %186 = vector.load %arg20[%c0_71, %c0_72] : memref<1x32xf32, #tpu.memory_space<vmem>>, vector<1x32xf32>
    %cst_73 = arith.constant dense<0.000000e+00> : vector<16xf32>
    %187 = vector.multi_reduction <add>, %184, %cst_73 [1] : vector<16x32xf32> to vector<16xf32>
    %188 = vector.shape_cast %187 : vector<16xf32> to vector<16x1xf32>
    %cst_74 = arith.constant 3.200000e+01 : f32
    %189 = vector.broadcast %cst_74 : f32 to vector<16x1xf32>
    %190 = arith.divf %188, %189 : vector<16x1xf32>
    %191 = vector.broadcast %190 : vector<16x1xf32> to vector<16x32xf32>
    %192 = arith.subf %184, %191 : vector<16x32xf32>
    %193 = arith.mulf %192, %192 : vector<16x32xf32>
    %cst_75 = arith.constant dense<0.000000e+00> : vector<16xf32>
    %194 = vector.multi_reduction <add>, %193, %cst_75 [1] : vector<16x32xf32> to vector<16xf32>
    %195 = vector.shape_cast %194 : vector<16xf32> to vector<16x1xf32>
    %cst_76 = arith.constant 3.200000e+01 : f32
    %196 = vector.broadcast %cst_76 : f32 to vector<16x1xf32>
    %197 = arith.divf %195, %196 : vector<16x1xf32>
    %198 = vector.broadcast %190 : vector<16x1xf32> to vector<16x32xf32>
    %199 = arith.subf %184, %198 : vector<16x32xf32>
    %cst_77 = arith.constant 9.99999997E-7 : f32
    %200 = vector.broadcast %cst_77 : f32 to vector<16x1xf32>
    %201 = arith.addf %197, %200 : vector<16x1xf32>
    %202 = math.rsqrt %201 : vector<16x1xf32>
    %203 = vector.broadcast %202 : vector<16x1xf32> to vector<16x32xf32>
    %204 = arith.mulf %199, %203 : vector<16x32xf32>
    %205 = vector.broadcast %185 : vector<1x32xf32> to vector<16x32xf32>
    %206 = arith.mulf %204, %205 : vector<16x32xf32>
    %207 = vector.broadcast %186 : vector<1x32xf32> to vector<16x32xf32>
    %208 = arith.addf %206, %207 : vector<16x32xf32>
    %209 = arith.truncf %208 : vector<16x32xf32> to vector<16x32xbf16>
    %c0_78 = arith.constant 0 : index
    %c0_79 = arith.constant 0 : index
    %210 = vector.load %arg13[%c0_78, %c0_79] : memref<64x32xbf16, #tpu.memory_space<vmem>>, vector<64x32xbf16>
    %cst_80 = arith.constant dense<0.000000e+00> : vector<16x64xf32>
    %211 = tpu.matmul %209, %210, %cst_80 {dimension_numbers = #tpu.dot_dimension_numbers<[1], [1], [0], [0], [0, 0, 1, 0], [], []>} : vector<16x32xbf16>, vector<64x32xbf16>, vector<16x64xf32> -> vector<16x64xf32>
    %c0_81 = arith.constant 0 : index
    %c0_82 = arith.constant 0 : index
    %212 = vector.load %arg14[%c0_81, %c0_82] : memref<1x64xf32, #tpu.memory_space<vmem>>, vector<1x64xf32>
    %213 = vector.broadcast %212 : vector<1x64xf32> to vector<16x64xf32>
    %214 = arith.addf %211, %213 : vector<16x64xf32>
    %cst_83 = arith.constant 0.000000e+00 : f32
    %215 = vector.broadcast %cst_83 : f32 to vector<16x64xf32>
    %216 = arith.maximumf %214, %215 : vector<16x64xf32>
    %217 = arith.truncf %216 : vector<16x64xf32> to vector<16x64xbf16>
    %c0_84 = arith.constant 0 : index
    %c0_85 = arith.constant 0 : index
    %218 = vector.load %arg15[%c0_84, %c0_85] : memref<32x64xbf16, #tpu.memory_space<vmem>>, vector<32x64xbf16>
    %cst_86 = arith.constant dense<0.000000e+00> : vector<16x32xf32>
    %219 = tpu.matmul %217, %218, %cst_86 {dimension_numbers = #tpu.dot_dimension_numbers<[1], [1], [0], [0], [0, 0, 1, 0], [], []>} : vector<16x64xbf16>, vector<32x64xbf16>, vector<16x32xf32> -> vector<16x32xf32>
    %c0_87 = arith.constant 0 : index
    %c0_88 = arith.constant 0 : index
    %220 = vector.load %arg16[%c0_87, %c0_88] : memref<1x32xf32, #tpu.memory_space<vmem>>, vector<1x32xf32>
    %221 = vector.broadcast %220 : vector<1x32xf32> to vector<16x32xf32>
    %222 = arith.addf %219, %221 : vector<16x32xf32>
    %223 = arith.addf %208, %222 : vector<16x32xf32>
    %c0_89 = arith.constant 0 : index
    %c0_90 = arith.constant 0 : index
    %224 = vector.load %arg21[%c0_89, %c0_90] : memref<1x32xf32, #tpu.memory_space<vmem>>, vector<1x32xf32>
    %c0_91 = arith.constant 0 : index
    %c0_92 = arith.constant 0 : index
    %225 = vector.load %arg22[%c0_91, %c0_92] : memref<1x32xf32, #tpu.memory_space<vmem>>, vector<1x32xf32>
    %cst_93 = arith.constant dense<0.000000e+00> : vector<16xf32>
    %226 = vector.multi_reduction <add>, %223, %cst_93 [1] : vector<16x32xf32> to vector<16xf32>
    %227 = vector.shape_cast %226 : vector<16xf32> to vector<16x1xf32>
    %cst_94 = arith.constant 3.200000e+01 : f32
    %228 = vector.broadcast %cst_94 : f32 to vector<16x1xf32>
    %229 = arith.divf %227, %228 : vector<16x1xf32>
    %230 = vector.broadcast %229 : vector<16x1xf32> to vector<16x32xf32>
    %231 = arith.subf %223, %230 : vector<16x32xf32>
    %232 = arith.mulf %231, %231 : vector<16x32xf32>
    %cst_95 = arith.constant dense<0.000000e+00> : vector<16xf32>
    %233 = vector.multi_reduction <add>, %232, %cst_95 [1] : vector<16x32xf32> to vector<16xf32>
    %234 = vector.shape_cast %233 : vector<16xf32> to vector<16x1xf32>
    %cst_96 = arith.constant 3.200000e+01 : f32
    %235 = vector.broadcast %cst_96 : f32 to vector<16x1xf32>
    %236 = arith.divf %234, %235 : vector<16x1xf32>
    %237 = vector.broadcast %229 : vector<16x1xf32> to vector<16x32xf32>
    %238 = arith.subf %223, %237 : vector<16x32xf32>
    %cst_97 = arith.constant 9.99999997E-7 : f32
    %239 = vector.broadcast %cst_97 : f32 to vector<16x1xf32>
    %240 = arith.addf %236, %239 : vector<16x1xf32>
    %241 = math.rsqrt %240 : vector<16x1xf32>
    %242 = vector.broadcast %241 : vector<16x1xf32> to vector<16x32xf32>
    %243 = arith.mulf %238, %242 : vector<16x32xf32>
    %244 = vector.broadcast %224 : vector<1x32xf32> to vector<16x32xf32>
    %245 = arith.mulf %243, %244 : vector<16x32xf32>
    %246 = vector.broadcast %225 : vector<1x32xf32> to vector<16x32xf32>
    %247 = arith.addf %245, %246 : vector<16x32xf32>
    %248 = vector.shape_cast %247 : vector<16x32xf32> to vector<2x8x32xf32>
    %c0_98 = arith.constant 0 : index
    %c0_99 = arith.constant 0 : index
    %c0_100 = arith.constant 0 : index
    %249 = vector.load %arg23[%c0_98, %c0_99, %c0_100] : memref<2x8x32xf32, #tpu.memory_space<vmem>>, vector<2x8x32xf32>
    tpu.vector_store %arg23[%c0_98, %c0_99, %c0_100], %248 {strides = array<i32>} : memref<2x8x32xf32, #tpu.memory_space<vmem>>, vector<2x8x32xf32>,
    %c0_101 = arith.constant 0 : index
    %c0_102 = arith.constant 0 : index
    %c0_103 = arith.constant 0 : index
    %250 = vector.load %arg24[%c0_101, %c0_102, %c0_103] : memref<2x8x8xf32, #tpu.memory_space<vmem>>, vector<2x8x8xf32>
    tpu.vector_store %arg24[%c0_101, %c0_102, %c0_103], %78 {strides = array<i32>} : memref<2x8x8xf32, #tpu.memory_space<vmem>>, vector<2x8x8xf32>,
    %c0_104 = arith.constant 0 : index
    %c0_105 = arith.constant 0 : index
    %c0_106 = arith.constant 0 : index
    %251 = vector.load %arg25[%c0_104, %c0_105, %c0_106] : memref<2x8x16xf32, #tpu.memory_space<vmem>>, vector<2x8x16xf32>
    tpu.vector_store %arg25[%c0_104, %c0_105, %c0_106], %183 {strides = array<i32>} : memref<2x8x16xf32, #tpu.memory_space<vmem>>, vector<2x8x16xf32>,
    return
  }
  func.func @transform_0(%arg0: i32) -> (i32, i32, i32) {
    %c0_i32 = arith.constant 0 : i32
    %c0_i32_0 = arith.constant 0 : i32
    %c0_i32_1 = arith.constant 0 : i32
    return %arg0, %c0_i32, %c0_i32_0 : i32, i32, i32
  }
  func.func @transform_1(%arg0: i32) -> (i32, i32, i32) {
    %c0_i32 = arith.constant 0 : i32
    %c0_i32_0 = arith.constant 0 : i32
    %c0_i32_1 = arith.constant 0 : i32
    return %arg0, %c0_i32, %c0_i32_0 : i32, i32, i32
  }
  func.func @transform_2(%arg0: i32) -> (i32, i32) {
    %c0_i32 = arith.constant 0 : i32
    %c0_i32_0 = arith.constant 0 : i32
    %c0_i32_1 = arith.constant 0 : i32
    return %c0_i32, %c0_i32_0 : i32, i32
  }
  func.func @transform_3(%arg0: i32) -> (i32, i32) {
    %c0_i32 = arith.constant 0 : i32
    %c0_i32_0 = arith.constant 0 : i32
    %c0_i32_1 = arith.constant 0 : i32
    return %c0_i32, %c0_i32_0 : i32, i32
  }
  func.func @transform_4(%arg0: i32) -> (i32, i32) {
    %c0_i32 = arith.constant 0 : i32
    %c0_i32_0 = arith.constant 0 : i32
    %c0_i32_1 = arith.constant 0 : i32
    return %c0_i32, %c0_i32_0 : i32, i32
  }
  func.func @transform_5(%arg0: i32) -> (i32, i32) {
    %c0_i32 = arith.constant 0 : i32
    %c0_i32_0 = arith.constant 0 : i32
    %c0_i32_1 = arith.constant 0 : i32
    return %c0_i32, %c0_i32_0 : i32, i32
  }
  func.func @transform_6(%arg0: i32) -> (i32, i32) {
    %c0_i32 = arith.constant 0 : i32
    %c0_i32_0 = arith.constant 0 : i32
    %c0_i32_1 = arith.constant 0 : i32
    return %c0_i32, %c0_i32_0 : i32, i32
  }
  func.func @transform_7(%arg0: i32) -> (i32, i32) {
    %c0_i32 = arith.constant 0 : i32
    %c0_i32_0 = arith.constant 0 : i32
    %c0_i32_1 = arith.constant 0 : i32
    return %c0_i32, %c0_i32_0 : i32, i32
  }
  func.func @transform_8(%arg0: i32) -> (i32, i32) {
    %c0_i32 = arith.constant 0 : i32
    %c0_i32_0 = arith.constant 0 : i32
    %c0_i32_1 = arith.constant 0 : i32
    return %c0_i32, %c0_i32_0 : i32, i32
  }
  func.func @transform_9(%arg0: i32) -> (i32, i32) {
    %c0_i32 = arith.constant 0 : i32
    %c0_i32_0 = arith.constant 0 : i32
    %c0_i32_1 = arith.constant 0 : i32
    return %c0_i32, %c0_i32_0 : i32, i32
  }
  func.func @transform_10(%arg0: i32) -> (i32, i32) {
    %c0_i32 = arith.constant 0 : i32
    %c0_i32_0 = arith.constant 0 : i32
    %c0_i32_1 = arith.constant 0 : i32
    return %c0_i32, %c0_i32_0 : i32, i32
  }
  func.func @transform_11(%arg0: i32) -> (i32, i32) {
    %c0_i32 = arith.constant 0 : i32
    %c0_i32_0 = arith.constant 0 : i32
    %c0_i32_1 = arith.constant 0 : i32
    return %c0_i32, %c0_i32_0 : i32, i32
  }
  func.func @transform_12(%arg0: i32) -> (i32, i32) {
    %c0_i32 = arith.constant 0 : i32
    %c0_i32_0 = arith.constant 0 : i32
    %c0_i32_1 = arith.constant 0 : i32
    return %c0_i32, %c0_i32_0 : i32, i32
  }
  func.func @transform_13(%arg0: i32) -> (i32, i32) {
    %c0_i32 = arith.constant 0 : i32
    %c0_i32_0 = arith.constant 0 : i32
    %c0_i32_1 = arith.constant 0 : i32
    return %c0_i32, %c0_i32_0 : i32, i32
  }
  func.func @transform_14(%arg0: i32) -> (i32, i32) {
    %c0_i32 = arith.constant 0 : i32
    %c0_i32_0 = arith.constant 0 : i32
    %c0_i32_1 = arith.constant 0 : i32
    return %c0_i32, %c0_i32_0 : i32, i32
  }
  func.func @transform_15(%arg0: i32) -> (i32, i32) {
    %c0_i32 = arith.constant 0 : i32
    %c0_i32_0 = arith.constant 0 : i32
    %c0_i32_1 = arith.constant 0 : i32
    return %c0_i32, %c0_i32_0 : i32, i32
  }
  func.func @transform_16(%arg0: i32) -> (i32, i32) {
    %c0_i32 = arith.constant 0 : i32
    %c0_i32_0 = arith.constant 0 : i32
    %c0_i32_1 = arith.constant 0 : i32
    return %c0_i32, %c0_i32_0 : i32, i32
  }
  func.func @transform_17(%arg0: i32) -> (i32, i32) {
    %c0_i32 = arith.constant 0 : i32
    %c0_i32_0 = arith.constant 0 : i32
    %c0_i32_1 = arith.constant 0 : i32
    return %c0_i32, %c0_i32_0 : i32, i32
  }
  func.func @transform_18(%arg0: i32) -> (i32, i32) {
    %c0_i32 = arith.constant 0 : i32
    %c0_i32_0 = arith.constant 0 : i32
    %c0_i32_1 = arith.constant 0 : i32
    return %c0_i32, %c0_i32_0 : i32, i32
  }
  func.func @transform_19(%arg0: i32) -> (i32, i32) {
    %c0_i32 = arith.constant 0 : i32
    %c0_i32_0 = arith.constant 0 : i32
    %c0_i32_1 = arith.constant 0 : i32
    return %c0_i32, %c0_i32_0 : i32, i32
  }
  func.func @transform_20(%arg0: i32) -> (i32, i32) {
    %c0_i32 = arith.constant 0 : i32
    %c0_i32_0 = arith.constant 0 : i32
    %c0_i32_1 = arith.constant 0 : i32
    return %c0_i32, %c0_i32_0 : i32, i32
  }
  func.func @transform_21(%arg0: i32) -> (i32, i32) {
    %c0_i32 = arith.constant 0 : i32
    %c0_i32_0 = arith.constant 0 : i32
    %c0_i32_1 = arith.constant 0 : i32
    return %c0_i32, %c0_i32_0 : i32, i32
  }
  func.func @transform_22(%arg0: i32) -> (i32, i32, i32) {
    %c0_i32 = arith.constant 0 : i32
    %c0_i32_0 = arith.constant 0 : i32
    %c0_i32_1 = arith.constant 0 : i32
    return %arg0, %c0_i32, %c0_i32_0 : i32, i32, i32
  }
  func.func @transform_23(%arg0: i32) -> (i32, i32, i32) {
    %c0_i32 = arith.constant 0 : i32
    %c0_i32_0 = arith.constant 0 : i32
    %c0_i32_1 = arith.constant 0 : i32
    return %arg0, %c0_i32, %c0_i32_0 : i32, i32, i32
  }
  func.func @transform_24(%arg0: i32) -> (i32, i32, i32) {
    %c0_i32 = arith.constant 0 : i32
    %c0_i32_0 = arith.constant 0 : i32
    %c0_i32_1 = arith.constant 0 : i32
    return %arg0, %c0_i32, %c0_i32_0 : i32, i32, i32
  }
}

</mosaic_0001>

<bundles_post_ra>
// kernel: tpu_custom_call.1
= control target key start
LH: loop header
LB: loop body
LE: loop exit
PB: predicated region body
PF: predicated region fallthrough
CT: control target
= control target key end

     0   :  { %s4147_s0 = inlined_call_operand.vmem [shape: f32[2,8,32], index: 0, kind: input, shape index: {}]   ;;  %s4148_s1 = inlined_call_operand.vmem [shape: f32[2,16,32], index: 1, kind: input, shape index: {}]   ;;  %s4149_s2 = inlined_call_operand.vmem [shape: bf16[96,32], index: 2, kind: input, shape index: {}]   ;;  %s4150_s3 = inlined_call_operand.vmem [shape: f32[1,96], index: 3, kind: input, shape index: {}]   ;;  %s4151_s4 = inlined_call_operand.vmem [shape: bf16[32,32], index: 4, kind: input, shape index: {}]   ;;  %s4152_s5 = inlined_call_operand.vmem [shape: f32[1,32], index: 5, kind: input, shape index: {}]   ;;  %s4153_s6 = inlined_call_operand.vmem [shape: bf16[32,32], index: 6, kind: input, shape index: {}]   ;;  %s4154_s7 = inlined_call_operand.vmem [shape: f32[1,32], index: 7, kind: input, shape index: {}]   ;;  %s4155_s8 = inlined_call_operand.vmem [shape: bf16[64,32], index: 8, kind: input, shape index: {}]   ;;  %s4156_s9 = inlined_call_operand.vmem [shape: f32[1,64], index: 9, kind: input, shape index: {}]   ;;  %s4157_s10 = inlined_call_operand.vmem [shape: bf16[32,32], index: 10, kind: input, shape index: {}]   ;;  %s4158_s11 = inlined_call_operand.vmem [shape: f32[1,32], index: 11, kind: input, shape index: {}]   ;;  %s4159_s12 = inlined_call_operand.vmem [shape: bf16[64,32], index: 12, kind: input, shape index: {}]   ;;  %s4160_s13 = inlined_call_operand.vmem [shape: f32[1,64], index: 13, kind: input, shape index: {}]   ;;  %s4161_s14 = inlined_call_operand.vmem [shape: bf16[32,64], index: 14, kind: input, shape index: {}]   ;;  %s4162_s15 = inlined_call_operand.vmem [shape: f32[1,32], index: 15, kind: input, shape index: {}]   ;;  %s4163_s16 = inlined_call_operand.vmem [shape: f32[1,32], index: 16, kind: input, shape index: {}]   ;;  %s4164_s17 = inlined_call_operand.vmem [shape: f32[1,32], index: 17, kind: input, shape index: {}]   ;;  %s4165_s18 = inlined_call_operand.vmem [shape: f32[1,32], index: 18, kind: input, shape index: {}]   ;;  %s4166_s19 = inlined_call_operand.vmem [shape: f32[1,32], index: 19, kind: input, shape index: {}]   ;;  %s4167_s20 = inlined_call_operand.vmem [shape: f32[1,32], index: 20, kind: input, shape index: {}]   ;;  %s4168_s21 = inlined_call_operand.vmem [shape: f32[1,32], index: 21, kind: input, shape index: {}]   ;;  %s4169_s22 = inlined_call_operand.hbm [shape: f32[2,8,32], index: 22, kind: output, shape index: {0}]   ;;  %s4170_s23 = inlined_call_operand.hbm [shape: f32[2,8,8], index: 23, kind: output, shape index: {1}]   ;;  %s4171_s24 = inlined_call_operand.hbm [shape: f32[2,8,16], index: 24, kind: output, shape index: {2}]  }
   0x1   :  { %4180 = sst [smem:[#allocation10_spill]] %s4147_s0 }
   0x2   :  { %4181 = sst [smem:[#allocation11_spill]] %s4148_s1 }
   0x3   :  { %4182 = sst [smem:[#allocation12_spill]] %s4149_s2 }
   0x4   :  { %4183 = sst [smem:[#allocation13_spill]] %s4150_s3 }
   0x5   :  { %4184 = sst [smem:[#allocation14_spill]] %s4151_s4 }
   0x6   :  { %4185 = sst [smem:[#allocation15_spill]] %s4152_s5 }
   0x7   :  { %4186 = sst [smem:[#allocation16_spill]] %s4153_s6 }
   0x8   :  { %4187 = sst [smem:[#allocation17_spill]] %s4154_s7 }
   0x9   :  { %4188 = sst [smem:[#allocation18_spill]] %s4155_s8 }
   0xa   :  { %30 = vsyncpa [#allocation4], 0  ;;  %s4189_s27 = sld [smem:[#allocation12_spill]]  ;;  %v3382_v1 = vmov 0.0   ;;  %vm133_vm0 = vcmask 261120   ;;  %vm3383_vm1 = vmmov 0  }
   0xb   :  { %2938 = vmatprep.subr.bf16.mxu0 %v3382_v1  ;;  %2954 = vmatprep.subr.bf16.mxu1 %v3382_v1 }
   0xc   :  { %2950 = vmatprep.mubr.msk.bf16.mxu0 %vm3383_vm1, %v3382_v1  ;;  %2956 = vmatprep.mubr.msk.bf16.mxu1 %vm3383_vm1, %v3382_v1 }
  0x10   :  { %v3220_v0 = vld [vmem:[%s4189_s27 + $0x28] sm:$0xff]   ;;  %v3221_v3 = vld [vmem:[%s4189_s27 + $0x20] sm:$0xff]   ;;  %v3222_v4 = vld [vmem:[%s4189_s27 + $0x18] sm:$0xff]  }
  0x11   :  { %v153_v2 = vsel %vm133_vm0, %v3220_v0, 0  ;;  %v150_v5 = vsel %vm133_vm0, %v3221_v3, 0  ;;  %v147_v6 = vsel %vm133_vm0, %v3222_v4, 0 }
  0x12   :  { %2939 = vmatpush3.bf16.xpose.msra.mxu0 %v153_v2 }
  0x13   :  { %2940 = vmatprep.subr.bf16.mxu0 %v3382_v1 }
  0x1a   :  { %2941 = vmatpush3.bf16.xpose.msra.mxu0 %v150_v5 }
  0x1b   :  { %2942 = vmatprep.subr.bf16.mxu0 %v3382_v1 }
  0x1c   :  { %31 = vsyncpa [#allocation6], 0  ;;  %v3223_v7 = vld [vmem:[%s4189_s27 + $0x10] sm:$0xff]   ;;  %v3224_v9 = vld [vmem:[%s4189_s27 + $0x8] sm:$0xff]   ;;  %s4190_s5 = sld [smem:[#allocation10_spill]]  ;;  %s3384_s29 = smov 112  }
  0x1d   :  { %v144_v8 = vsel %vm133_vm0, %v3223_v7, 0  ;;  %v141_v10 = vsel %vm133_vm0, %v3224_v9, 0  ;;  %v3225_v11 = vld [vmem:[%s4189_s27] sm:$0xff]   ;;  %s4191_s2 = sld [smem:[#allocation13_spill]]  ;;  %s3385_s0 = smov 120   ;;  %vm241_vm2 = vcmask 64512  }
  0x1e   :  { %v138_v12 = vsel %vm133_vm0, %v3225_v11, 0  ;;  %s3386_s7 = smov 104   ;;  %s3387_s30 = smov 96   ;;  %vm737_vm3 = vcmask 1043456   ;;  %vm1127_vm4 = vcmask 130112   ;;  %vm1138_vm5 = vcmask 195712  }
  0x1f   :  { %s3388_s3 = smov 64   ;;  %s3389_s25 = smov 8   ;;  %vm1149_vm6 = vcmask 261312   ;;  %vm1863_vm7 = vcmask 130048   ;;  %vm2601_vm8 = vcmask 523264  }
  0x20   :  { %s4192_s1 = sld [smem:[#allocation14_spill]]  ;;  %s4178_s27 = smov 24  }
  0x21   :  { %s4195_s26 = sld [smem:[#allocation11_spill]] }
  0x22   :  { %2943 = vmatpush3.bf16.xpose.msra.mxu0 %v147_v6  ;;  %v3559_v13 = vld [vmem:[%s4190_s5] sm:$0xff]  ;;  %v3564_v14 = vld [vmem:[%s4190_s5 + $0x8] sm:$0xff]  ;;  %s3390_s5 = smov 16   ;;  %s4196_s28 = sld [smem:[#allocation16_spill]] }
  0x23   :  { %2944 = vmatprep.subr.bf16.mxu0 %v3382_v1  ;;  %v83_v15 = vpack.c.bf16 %v3564_v14, %v3559_v13  ;;  %v2751_v16 = vld [vmem:[%s4191_s2] ss:$0 sm:$0xff] }
  0x2a   :  { %2945 = vmatpush3.bf16.xpose.msra.mxu0 %v144_v8 }
  0x2b   :  { %2946 = vmatprep.subr.bf16.mxu0 %v3382_v1 }
  0x32   :  { %2947 = vmatpush3.bf16.xpose.msra.mxu0 %v141_v10 }
  0x33   :  { %2948 = vmatprep.subr.bf16.mxu0 %v3382_v1 }
  0x3a   :  { %2949 = vmatpush3.bf16.xpose.msra.mxu0 %v138_v12 }
  0x3b   :  { %2990 = vmatprep.subr.bf16.mxu0 %v3382_v1 }
  0x41   :  { %2951 = vmatmul.mubr.msk.bf16.vlgmr.msra.gmra.mxu0 %vm133_vm0, %v83_v15 }
  0x42   :  { %2992 = vmatprep.mubr.msk.bf16.mxu0 %vm3383_vm1, %v3382_v1 }
 0x101   :  { %v189_v17 = vpop.f32.mrf.mxu0 }
 0x102   :  { %v190_v18 = vadd.f32 %v2751_v16, %v189_v17 }
 0x103   :  { %v2952_v19 = vpop.f32.mrf.mxu0 }
 0x104   :  { %v2840_v20 = vpack.c.bf16 %v190_v18, %v190_v18  ;;  %v201_v25 = vmul.f32 0.35355338, %v190_v18 }
 0x105   :  { %v192_v21 = vpop.f32.mrf.mxu0 }
 0x106   :  { %v193_v22 = vadd.f32 %v2751_v16, %v192_v21  ;;  %231 = vrot.lane.b32.xlu1 %v2840_v20, %s3384_s29  ;;  %227 = vrot.lane.b32.xlu0 %v2840_v20, %s3385_s0  ;;  %v2838_v26 = vpack.c.bf16 %v201_v25, %v201_v25 }
 0x107   :  { %v2953_v23 = vpop.f32.mrf.mxu0 }
 0x108   :  { %v3577_v24 = vpack.c.bf16 %v193_v22, %v193_v22  ;;  %v202_v27 = vmul.f32 0.35355338, %v193_v22 }
 0x10a   :  { %233 = vrot.lane.b32.xlu1 %v3577_v24, %s3384_s29  ;;  %229 = vrot.lane.b32.xlu0 %v3577_v24, %s3385_s0  ;;  %v2839_v28 = vpack.c.bf16 %v202_v27, %v202_v27 }
 0x10e   :  { %237 = vrot.lane.b32.xlu1 %v3577_v24, %s3386_s7  ;;  %235 = vrot.lane.b32.xlu0 %v2840_v20, %s3386_s7 }
 0x112   :  { %288 = vrot.lane.b32.xlu1 %v3577_v24, %s3387_s30  ;;  %239 = vrot.lane.b32.xlu0 %v2840_v20, %s3387_s30 }
 0x116   :  { %209 = vrot.lane.b32.xlu1 %v2838_v26, %s3385_s0 }
 0x11a   :  { %211 = vrot.lane.b32.xlu1 %v2839_v28, %s3385_s0 }
 0x11e   :  { %213 = vrot.lane.b32.xlu1 %v2838_v26, %s3384_s29 }
 0x122   :  { %215 = vrot.lane.b32.xlu1 %v2839_v28, %s3384_s29 }
 0x178   :  { %v232_v29 = vpop.permute.xlu1 %231  ;;  %v228_v30 = vpop.permute.xlu0 %227 }
 0x179   :  { %v3593_v31 = vcombine.low %v228_v30, %v228_v30  ;;  %v3601_v37 = vcombine.low %v232_v29, %v232_v29 }
 0x17b   :  { %338 = vrot.lane.b32.xlu0 %v3593_v31, %s3387_s30 }
 0x17c   :  { %v234_v32 = vpop.permute.xlu1 %233  ;;  %v230_v33 = vpop.permute.xlu0 %229 }
 0x17d   :  { %v3597_v34 = vcombine.low %v230_v33, %v230_v33  ;;  %v3609_v40 = vcombine.low %v234_v32, %v234_v32 }
 0x17f   :  { %388 = vrot.lane.b32.xlu0 %v3597_v34, %s3387_s30 }
 0x180   :  { %v238_v35 = vpop.permute.xlu1 %237  ;;  %v236_v36 = vpop.permute.xlu0 %235 }
 0x181   :  { %v3603_v38 = vcombine.low %v238_v35, %v238_v35  ;;  %v3616_v42 = vcombine.low %v236_v36, %v236_v36 }
 0x183   :  { %438 = vrot.lane.b32.xlu0 %v3601_v37, %s3387_s30  ;;  %588 = vrot.lane.b32.xlu1 %v3603_v38, %s3387_s30 }
 0x184   :  { %v240_v39 = vpop.permute.xlu0 %239  ;;  %v289_v43 = vpop.permute.xlu1 %288 }
 0x185   :  { %v246_v41 = vsel %vm241_vm2, %v240_v39, 0  ;;  %v294_v44 = vsel %vm241_vm2, %v289_v43, 0 }
 0x186   :  { %2955 = vmatpush3.bf16.xpose.msra.mxu1 %v246_v41 }
 0x187   :  { %488 = vrot.lane.b32.xlu0 %v3609_v40, %s3387_s30  ;;  %219 = vrot.lane.b32.xlu1 %v2839_v28, %s3386_s7 }
 0x188   :  { %2960 = vmatprep.subr.bf16.mxu1 %v3382_v1  ;;  %v210_v45 = vpop.permute.xlu1 %209 }
 0x18b   :  { %538 = vrot.lane.b32.xlu0 %v3616_v42, %s3387_s30  ;;  %732 = vrot.lane.b32.xlu1 %v2840_v20, %s3388_s3 }
 0x18c   :  { %v212_v46 = vpop.permute.xlu1 %211 }
 0x18d   :  { %2957 = vmatmul.mubr.msk.bf16.vlgmr.msra.gmra.mxu1 %vm241_vm2, %v2838_v26 }
 0x18e   :  { %2961 = vmatpush3.bf16.xpose.msra.mxu1 %v294_v44  ;;  %2962 = vmatprep.mubr.msk.bf16.mxu1 %vm3383_vm1, %v3382_v1 }
 0x18f   :  { %217 = vrot.lane.b32.xlu0 %v2838_v26, %s3386_s7  ;;  %2966 = vmatprep.subr.bf16.mxu1 %v3382_v1 }
 0x190   :  { %v214_v47 = vpop.permute.xlu1 %213 }
 0x194   :  { %v216_v51 = vpop.permute.xlu1 %215 }
 0x195   :  { %2963 = vmatmul.mubr.msk.bf16.vlgmr.msra.gmra.mxu1 %vm241_vm2, %v2839_v28 }
 0x196   :  { %2968 = vmatprep.mubr.msk.bf16.mxu1 %vm3383_vm1, %v3382_v1 }
 0x1ed   :  { %v339_v48 = vpop.permute.xlu0 %338 }
 0x1ee   :  { %v344_v49 = vsel %vm241_vm2, %v339_v48, 0 }
 0x1ef   :  { %2967 = vmatpush3.bf16.xpose.msra.mxu1 %v344_v49 }
 0x1f0   :  { %2972 = vmatprep.subr.bf16.mxu1 %v3382_v1 }
 0x1f1   :  { %v389_v50 = vpop.permute.xlu0 %388 }
 0x1f2   :  { %v394_v53 = vsel %vm241_vm2, %v389_v50, 0 }
 0x1f5   :  { %v439_v52 = vpop.permute.xlu0 %438  ;;  %v589_v54 = vpop.permute.xlu1 %588 }
 0x1f6   :  { %2969 = vmatmul.mubr.msk.bf16.vlgmr.msra.gmra.mxu1 %vm241_vm2, %v210_v45  ;;  %v444_v58 = vsel %vm241_vm2, %v439_v52, 0  ;;  %v594_v0 = vsel %vm241_vm2, %v589_v54, 0 }
 0x1f7   :  { %2973 = vmatpush3.bf16.xpose.msra.mxu1 %v394_v53  ;;  %2974 = vmatprep.mubr.msk.bf16.mxu1 %vm3383_vm1, %v3382_v1 }
 0x1f8   :  { %2978 = vmatprep.subr.bf16.mxu1 %v3382_v1 }
 0x1f9   :  { %v489_v55 = vpop.permute.xlu0 %488  ;;  %v220_v56 = vpop.permute.xlu1 %219 }
 0x1fa   :  { %v494_v62 = vsel %vm241_vm2, %v489_v55, 0 }
 0x1fd   :  { %v539_v57 = vpop.permute.xlu0 %538  ;;  %v733_v60 = vpop.permute.xlu1 %732 }
 0x1fe   :  { %v544_v59 = vsel %vm241_vm2, %v539_v57, 0  ;;  %2975 = vmatmul.mubr.msk.bf16.vlgmr.msra.gmra.mxu1 %vm241_vm2, %v212_v46  ;;  %v739_v63 = vsel %vm737_vm3, %v733_v60, 0 }
 0x1ff   :  { %2979 = vmatpush3.bf16.xpose.msra.mxu1 %v444_v58  ;;  %2991 = vmatpush3.bf16.xpose.msra.mxu0 %v544_v59 }
 0x200   :  { %2980 = vmatprep.mubr.msk.bf16.mxu1 %vm3383_vm1, %v3382_v1  ;;  %2984 = vmatprep.subr.bf16.mxu1 %v3382_v1 }
 0x201   :  { %3002 = vmatprep.subr.bf16.mxu0 %v3382_v1  ;;  %v218_v61 = vpop.permute.xlu0 %217 }
 0x206   :  { %2981 = vmatmul.mubr.msk.bf16.vlgmr.msra.gmra.mxu1 %vm241_vm2, %v214_v47  ;;  %2993 = vmatmul.mubr.msk.bf16.vlgmr.msra.gmra.mxu0 %vm241_vm2, %v218_v61 }
 0x207   :  { %2985 = vmatpush3.bf16.xpose.msra.mxu1 %v494_v62  ;;  %3003 = vmatpush3.bf16.msra.mxu0 %v739_v63 }
 0x208   :  { %2986 = vmatprep.mubr.msk.bf16.mxu1 %vm3383_vm1, %v3382_v1  ;;  %2996 = vmatprep.subr.bf16.mxu1 %v3382_v1 }
 0x209   :  { %3004 = vmatprep.mubr.msk.bf16.mxu0 %vm3383_vm1, %v3382_v1  ;;  %3014 = vmatprep.subr.bf16.mxu0 %v3382_v1 }
 0x20e   :  { %2987 = vmatmul.mubr.msk.bf16.vlgmr.msra.gmra.mxu1 %vm241_vm2, %v216_v51 }
 0x20f   :  { %2997 = vmatpush3.bf16.xpose.msra.mxu1 %v594_v0  ;;  %2998 = vmatprep.mubr.msk.bf16.mxu1 %vm3383_vm1, %v3382_v1 }
 0x210   :  { %3008 = vmatprep.subr.bf16.mxu1 %v3382_v1 }
 0x216   :  { %2999 = vmatmul.mubr.msk.bf16.vlgmr.msra.gmra.mxu1 %vm241_vm2, %v220_v56 }
 0x217   :  { %3010 = vmatprep.mubr.msk.bf16.mxu1 %vm3383_vm1, %v3382_v1 }
 0x24d   :  { %v282_v2 = vpop.f32.mrf.mxu1 }
 0x24e   :  { %v636_v3 = vsel %vm241_vm2, %v282_v2, -inf }
 0x24f   :  { %637 = vmax.xlane.f32.xlu0 %v636_v3  ;;  %v2958_v4 = vpop.f32.mrf.mxu1 }
 0x251   :  { %v285_v5 = vpop.f32.mrf.mxu1 }
 0x253   :  { %v2959_v6 = vpop.f32.mrf.mxu1 }
 0x255   :  { %v330_v7 = vpop.f32.mrf.mxu1 }
 0x256   :  { %v639_v8 = vsel %vm241_vm2, %v330_v7, -inf }
 0x257   :  { %640 = vmax.xlane.f32.xlu1 %v639_v8  ;;  %v2964_v9 = vpop.f32.mrf.mxu1 }
 0x259   :  { %v333_v10 = vpop.f32.mrf.mxu1 }
 0x25b   :  { %v2965_v11 = vpop.f32.mrf.mxu1 }
 0x2b6   :  { %v380_v12 = vpop.f32.mrf.mxu1 }
 0x2b7   :  { %v642_v15 = vsel %vm241_vm2, %v380_v12, -inf }
 0x2b8   :  { %643 = vmax.xlane.f32.xlu0 %v642_v15  ;;  %v2970_v16 = vpop.f32.mrf.mxu1 }
 0x2ba   :  { %v383_v17 = vpop.f32.mrf.mxu1 }
 0x2bc   :  { %v2971_v18 = vpop.f32.mrf.mxu1 }
 0x2be   :  { %v430_v19 = vpop.f32.mrf.mxu1 }
 0x2bf   :  { %v645_v20 = vsel %vm241_vm2, %v430_v19, -inf }
 0x2c0   :  { %646 = vmax.xlane.f32.xlu0 %v645_v20  ;;  %v2976_v21 = vpop.f32.mrf.mxu1 }
 0x2c2   :  { %v433_v22 = vpop.f32.mrf.mxu1 }
 0x2c4   :  { %v2977_v23 = vpop.f32.mrf.mxu1 }
 0x2c6   :  { %v3666_v25 = vpop.f32.mrf.mxu1  ;;  %v580_v26 = vpop.f32.mrf.mxu0 }
 0x2c7   :  { %v654_v27 = vsel %vm241_vm2, %v580_v26, -inf  ;;  %v648_v33 = vsel %vm241_vm2, %v3666_v25, -inf }
 0x2c8   :  { %v2982_v28 = vpop.f32.mrf.mxu1  ;;  %655 = vmax.xlane.f32.xlu1 %v654_v27  ;;  %v2994_v29 = vpop.f32.mrf.mxu0 }
 0x2ca   :  { %v483_v30 = vpop.f32.mrf.mxu1  ;;  %v583_v32 = vpop.f32.mrf.mxu0 }
 0x2cc   :  { %v2983_v35 = vpop.f32.mrf.mxu1  ;;  %649 = vmax.xlane.f32.xlu1 %v648_v33  ;;  %v2995_v36 = vpop.f32.mrf.mxu0 }
 0x2ce   :  { %v530_v39 = vpop.f32.mrf.mxu1 }
 0x2cf   :  { %v651_v41 = vsel %vm241_vm2, %v530_v39, -inf }
 0x2d0   :  { %652 = vmax.xlane.f32.xlu0 %v651_v41  ;;  %v2988_v43 = vpop.f32.mrf.mxu1 }
 0x2d2   :  { %v533_v44 = vpop.f32.mrf.mxu1 }
 0x2d4   :  { %v2989_v45 = vpop.f32.mrf.mxu1 }
 0x2d6   :  { %v630_v46 = vpop.f32.mrf.mxu1 }
 0x2d7   :  { %v657_v47 = vsel %vm241_vm2, %v630_v46, -inf }
 0x2d8   :  { %658 = vmax.xlane.f32.xlu0 %v657_v47  ;;  %v3000_v48 = vpop.f32.mrf.mxu1  ;;  %v638_v51 = vpop.xlane.xlu0 %637 }
 0x2d9   :  { %v660_v52 = vsub.f32 %v282_v2, %v638_v51 }
 0x2da   :  { %v633_v49 = vpop.f32.mrf.mxu1 }
 0x2db   :  { %v668_v53 = vmul.f32 1.442695, %v660_v52 }
 0x2dc   :  { %v3001_v50 = vpop.f32.mrf.mxu1 }
 0x2dd   :  { %829 = vrot.lane.b32.xlu1 %v3593_v31, %s3388_s3  ;;  %3242 = vpow2.f32 %v668_v53 }
 0x2e0   :  { %v641_v54 = vpop.xlane.xlu1 %640 }
 0x2e1   :  { %877 = vrot.lane.b32.xlu1 %v3597_v34, %s3388_s3  ;;  %v661_v55 = vsub.f32 %v330_v7, %v641_v54 }
 0x2e3   :  { %v670_v56 = vmul.f32 1.442695, %v661_v55 }
 0x2e5   :  { %3244 = vpow2.f32 %v670_v56 }
 0x2ea   :  { %v3243_v57 = vpop.eup %3242 }
 0x2eb   :  { %v684_v58 = vsel %vm241_vm2, %v3243_v57, 0.0 }
 0x2ee   :  { %781 = vrot.lane.b32.xlu0 %v3577_v24, %s3388_s3 }
 0x2f2   :  { %v3680_v59 = vpop.eup %3244 }
 0x2f3   :  { %v687_v31 = vsel %vm241_vm2, %v3680_v59, 0.0 }
 0x305   :  { %685 = vadd.xlane.f32.xlu1 %v684_v58 }
 0x30d   :  { %688 = vadd.xlane.f32.xlu0 %v687_v31 }
 0x341   :  { %v644_v34 = vpop.xlane.xlu0 %643 }
 0x342   :  { %v662_v60 = vsub.f32 %v380_v12, %v644_v34 }
 0x344   :  { %v672_v61 = vmul.f32 1.442695, %v662_v60 }
 0x346   :  { %3246 = vpow2.f32 %v672_v61 }
 0x349   :  { %v647_v24 = vpop.xlane.xlu0 %646 }
 0x34a   :  { %v663_v62 = vsub.f32 %v430_v19, %v647_v24 }
 0x34c   :  { %v674_v63 = vmul.f32 1.442695, %v663_v62 }
 0x34e   :  { %3248 = vpow2.f32 %v674_v63 }
 0x351   :  { %v656_v0 = vpop.xlane.xlu1 %655 }
 0x352   :  { %v666_v2 = vsub.f32 %v580_v26, %v656_v0 }
 0x353   :  { %v3684_v3 = vpop.eup %3246 }
 0x354   :  { %v680_v4 = vmul.f32 1.442695, %v666_v2  ;;  %v690_v5 = vsel %vm241_vm2, %v3684_v3, 0.0 }
 0x355   :  { %691 = vadd.xlane.f32.xlu1 %v690_v5  ;;  %v650_v19 = vpop.xlane.xlu1 %649 }
 0x356   :  { %3250 = vpow2.f32 %v680_v4  ;;  %v664_v20 = vsub.f32 %v3666_v25, %v650_v19 }
 0x358   :  { %v676_v23 = vmul.f32 1.442695, %v664_v20 }
 0x359   :  { %v653_v8 = vpop.xlane.xlu0 %652  ;;  %v830_v22 = vpop.permute.xlu1 %829 }
 0x35a   :  { %v665_v16 = vsub.f32 %v530_v39, %v653_v8  ;;  %v835_v39 = vsel %vm737_vm3, %v830_v22, 0 }
 0x35b   :  { %v3688_v6 = vpop.eup %3248 }
 0x35c   :  { %v693_v7 = vsel %vm241_vm2, %v3688_v6, 0.0  ;;  %v678_v17 = vmul.f32 1.442695, %v665_v16 }
 0x35d   :  { %694 = vadd.xlane.f32.xlu0 %v693_v7  ;;  %v878_v26 = vpop.permute.xlu1 %877 }
 0x35e   :  { %3252 = vpow2.f32 %v678_v17  ;;  %v883_v45 = vsel %vm737_vm3, %v878_v26, 0 }
 0x361   :  { %v659_v9 = vpop.xlane.xlu0 %658 }
 0x362   :  { %v667_v18 = vsub.f32 %v630_v46, %v659_v9 }
 0x363   :  { %v3692_v10 = vpop.eup %3250 }
 0x364   :  { %v702_v11 = vsel %vm241_vm2, %v3692_v10, 0.0  ;;  %v682_v21 = vmul.f32 1.442695, %v667_v18 }
 0x365   :  { %v782_v12 = vpop.permute.xlu0 %781  ;;  %703 = vadd.xlane.f32.xlu1 %v702_v11 }
 0x366   :  { %v787_v15 = vsel %vm737_vm3, %v782_v12, 0  ;;  %3254 = vpow2.f32 %v682_v21 }
 0x367   :  { %3009 = vmatpush3.bf16.msra.mxu1 %v787_v15  ;;  %3256 = vpow2.f32 %v676_v23 }
 0x368   :  { %3020 = vmatprep.subr.bf16.mxu1 %v3382_v1 }
 0x36b   :  { %v3253_v27 = vpop.eup %3252 }
 0x373   :  { %925 = vrot.lane.b32.xlu0 %v3601_v37, %s3388_s3  ;;  %v699_v37 = vsel %vm241_vm2, %v3253_v27, 0.0  ;;  %v3704_v29 = vpop.eup %3254 }
 0x374   :  { %v3708_v30 = vpop.eup %3256 }
 0x375   :  { %v696_v32 = vsel %vm241_vm2, %v3708_v30, 0.0 }
 0x376   :  { %973 = vrot.lane.b32.xlu1 %v3609_v40, %s3388_s3  ;;  %v705_v40 = vsel %vm241_vm2, %v3704_v29, 0.0 }
 0x38e   :  { %v686_v28 = vpop.xlane.xlu1 %685 }
 0x38f   :  { %3258 = vrcp.f32 %v686_v28 }
 0x392   :  { %700 = vadd.xlane.f32.xlu0 %v699_v37 }
 0x396   :  { %706 = vadd.xlane.f32.xlu0 %v705_v40  ;;  %v689_v25 = vpop.xlane.xlu0 %688 }
 0x397   :  { %3260 = vrcp.f32 %v689_v25 }
 0x39a   :  { %697 = vadd.xlane.f32.xlu1 %v696_v32 }
 0x39c   :  { %v3259_v33 = vpop.eup %3258 }
 0x39d   :  { %v3712_v35 = vmul.f32 %v3259_v33, %v3243_v57 }
 0x39f   :  { %v724_v36 = vpack.c.bf16 %v3712_v35, %v3712_v35 }
 0x3a1   :  { %3005 = vmatmul.mubr.msk.bf16.vlgmr.msra.gmra.mxu0 %vm241_vm2, %v724_v36 }
 0x3a2   :  { %3015 = vmatpush3.bf16.msra.mxu0 %v835_v39  ;;  %3016 = vmatprep.mubr.msk.bf16.mxu0 %vm3383_vm1, %v3382_v1  ;;  %v3226_v39 = vld [vmem:[%s4192_s1 + $0x8] sm:$0xff]  }
 0x3a3   :  { %3026 = vmatprep.subr.bf16.mxu0 %v3382_v1 }
 0x3a4   :  { %v3261_v41 = vpop.eup %3260 }
 0x3a5   :  { %v717_v43 = vmul.f32 %v3261_v41, %v3680_v59  ;;  %v1178_v41 = vsel %vm133_vm0, %v3226_v39, 0 }
 0x3a7   :  { %v725_v44 = vpack.c.bf16 %v717_v43, %v717_v43 }
 0x3a9   :  { %3011 = vmatmul.mubr.msk.bf16.vlgmr.msra.gmra.mxu1 %vm241_vm2, %v725_v44 }
 0x3aa   :  { %3021 = vmatpush3.bf16.msra.mxu1 %v883_v45  ;;  %3022 = vmatprep.mubr.msk.bf16.mxu1 %vm3383_vm1, %v3382_v1 }
 0x3ab   :  { %1069 = vrot.lane.b32.xlu1 %v3603_v38, %s3388_s3  ;;  %3032 = vmatprep.subr.bf16.mxu1 %v3382_v1 }
 0x3ac   :  { %1021 = vrot.lane.b32.xlu0 %v3616_v42, %s3388_s3  ;;  %s4193_s3 = sld [smem:[#allocation15_spill]] }
 0x3de   :  { %v692_v46 = vpop.xlane.xlu1 %691 }
 0x3df   :  { %3262 = vrcp.f32 %v692_v46  ;;  %v3227_v46 = vld [vmem:[%s4192_s1] sm:$0xff]   ;;  %s4194_s1 = sld [smem:[#allocation18_spill]] }
 0x3e6   :  { %v695_v47 = vpop.xlane.xlu0 %694 }
 0x3e7   :  { %3264 = vrcp.f32 %v695_v47 }
 0x3ea   :  { %v926_v50 = vpop.permute.xlu0 %925 }
 0x3eb   :  { %v931_v53 = vsel %vm737_vm3, %v926_v50, 0 }
 0x3ec   :  { %v3263_v48 = vpop.eup %3262 }
 0x3ed   :  { %v718_v49 = vmul.f32 %v3263_v48, %v3684_v3  ;;  %v1175_v48 = vsel %vm133_vm0, %v3227_v46, 0 }
 0x3ee   :  { %v704_v52 = vpop.xlane.xlu1 %703 }
 0x3ef   :  { %v726_v51 = vpack.c.bf16 %v718_v49, %v718_v49  ;;  %v1223_v7 = vadd.f32 %v718_v49, %v3712_v35 }
 0x3f1   :  { %3017 = vmatmul.mubr.msk.bf16.vlgmr.msra.gmra.mxu0 %vm241_vm2, %v726_v51 }
 0x3f2   :  { %3027 = vmatpush3.bf16.msra.mxu0 %v931_v53  ;;  %3028 = vmatprep.mubr.msk.bf16.mxu0 %vm3383_vm1, %v3382_v1  ;;  %v974_v54 = vpop.permute.xlu1 %973 }
 0x3f3   :  { %3038 = vmatprep.subr.bf16.mxu0 %v3382_v1  ;;  %v979_v56 = vsel %vm737_vm3, %v974_v54, 0 }
 0x3f4   :  { %v3265_v38 = vpop.eup %3264 }
 0x3f5   :  { %v719_v42 = vmul.f32 %v3265_v38, %v3688_v6 }
 0x3f7   :  { %v727_v55 = vpack.c.bf16 %v719_v42, %v719_v42  ;;  %v1224_v24 = vadd.f32 %v719_v42, %v717_v43 }
 0x3f9   :  { %3023 = vmatmul.mubr.msk.bf16.vlgmr.msra.gmra.mxu1 %vm241_vm2, %v727_v55 }
 0x3fa   :  { %3033 = vmatpush3.bf16.msra.mxu1 %v979_v56  ;;  %3034 = vmatprep.mubr.msk.bf16.mxu1 %vm3383_vm1, %v3382_v1 }
 0x3fb   :  { %3044 = vmatprep.subr.bf16.mxu1 %v3382_v1 }
 0x41b   :  { %v701_v57 = vpop.xlane.xlu0 %700 }
 0x41c   :  { %3266 = vrcp.f32 %v701_v57 }
 0x41f   :  { %v707_v58 = vpop.xlane.xlu0 %706 }
 0x420   :  { %3268 = vrcp.f32 %v707_v58 }
 0x421   :  { %3270 = vrcp.f32 %v704_v52 }
 0x423   :  { %v698_v59 = vpop.xlane.xlu1 %697  ;;  %v1022_v9 = vpop.permute.xlu0 %1021 }
 0x424   :  { %3272 = vrcp.f32 %v698_v59  ;;  %v1027_v17 = vsel %vm737_vm3, %v1022_v9, 0 }
 0x427   :  { %v1070_v60 = vpop.permute.xlu1 %1069 }
 0x428   :  { %v1075_v63 = vsel %vm737_vm3, %v1070_v60, 0 }
 0x429   :  { %v3267_v31 = vpop.eup %3266 }
 0x42a   :  { %v721_v34 = vmul.f32 %v3267_v31, %v3253_v27 }
 0x42c   :  { %v729_v61 = vpack.c.bf16 %v721_v34, %v721_v34  ;;  %v1226_v2 = vadd.f32 %v1224_v24, %v721_v34 }
 0x42d   :  { %v3269_v62 = vpop.eup %3268 }
 0x42e   :  { %3035 = vmatmul.mubr.msk.bf16.vlgmr.msra.gmra.mxu1 %vm241_vm2, %v729_v61  ;;  %v723_v0 = vmul.f32 %v3269_v62, %v3704_v29  ;;  %v3271_v3 = vpop.eup %3270 }
 0x42f   :  { %3045 = vmatpush3.bf16.msra.mxu1 %v1075_v63  ;;  %3046 = vmatprep.mubr.msk.bf16.mxu1 %vm3383_vm1, %v3382_v1  ;;  %v722_v15 = vmul.f32 %v3271_v3, %v3692_v10 }
 0x430   :  { %3058 = vmatprep.subr.bf16.mxu1 %v3382_v1  ;;  %v1228_v4 = vadd.f32 %v1226_v2, %v723_v0  ;;  %v731_v12 = vpack.c.bf16 %v723_v0, %v723_v0  ;;  %v2785_v2 = vld [vmem:[%s4193_s3] ss:$0 sm:$0xff] }
 0x431   :  { %v3273_v5 = vpop.eup %3272  ;;  %v730_v19 = vpack.c.bf16 %v722_v15, %v722_v15 }
 0x432   :  { %v720_v6 = vmul.f32 %v3273_v5, %v3708_v30  ;;  %v1230_v8 = vmul.f32 0.25, %v1228_v4 }
 0x434   :  { %v728_v11 = vpack.c.bf16 %v720_v6, %v720_v6  ;;  %v1225_v16 = vadd.f32 %v1223_v7, %v720_v6  ;;  %2701 = vst.msk [vmem:[#allocation5 + $0x8] sm:$0xff] %vm241_vm2, %v1230_v8 }
 0x436   :  { %3029 = vmatmul.mubr.msk.bf16.vlgmr.msra.gmra.mxu0 %vm241_vm2, %v728_v11  ;;  %3047 = vmatmul.mubr.msk.bf16.vlgmr.msra.gmra.mxu1 %vm241_vm2, %v731_v12  ;;  %v1227_v18 = vadd.f32 %v1225_v16, %v722_v15  ;;  %v3228_v16 = vld [vmem:[%s4194_s1 + $0x18] sm:$0xff]  }
 0x437   :  { %3039 = vmatpush3.bf16.msra.mxu0 %v1027_v17  ;;  %3040 = vmatprep.mubr.msk.bf16.mxu0 %vm3383_vm1, %v3382_v1  ;;  %v3229_v17 = vld [vmem:[%s4194_s1 + $0x10] sm:$0xff]  }
 0x438   :  { %3050 = vmatprep.subr.bf16.mxu0 %v3382_v1  ;;  %3062 = vmatprep.mubr.msk.bf16.mxu1 %vm3383_vm1, %v3382_v1  ;;  %v1229_v10 = vmul.f32 0.25, %v1227_v18  ;;  %v3230_v18 = vld [vmem:[%s4194_s1 + $0x8] sm:$0xff]  }
 0x43a   :  { %2700 = vst.msk [vmem:[#allocation5] sm:$0xff] %vm241_vm2, %v1229_v10  ;;  %v1397_v10 = vsel %vm133_vm0, %v3230_v18, 0 }
 0x43e   :  { %3041 = vmatmul.mubr.msk.bf16.vlgmr.msra.gmra.mxu0 %vm241_vm2, %v730_v19  ;;  %v3231_v19 = vld [vmem:[%s4194_s1] sm:$0xff]   ;;  %s4197_s1 = sld [smem:[#allocation17_spill]] }
 0x43f   :  { %3054 = vmatprep.mubr.msk.bf16.mxu0 %vm3383_vm1, %v3382_v1  ;;  %3051 = vmatpush3.bf16.xpose.msra.mxu0 %v1178_v41  ;;  %v3232_v41 = vld [vmem:[%s4196_s28 + $0x8] sm:$0xff]  }
 0x440   :  { %3052 = vmatprep.subr.bf16.mxu0 %v3382_v1 }
 0x447   :  { %3053 = vmatpush3.bf16.xpose.msra.mxu0 %v1175_v48 }
 0x448   :  { %3202 = vmatprep.subr.msk.bf16.mxu0 %vm133_vm0, %v3228_v16 }
 0x461   :  { %v775_v20 = vpop.f32.mrf.mxu0 }
 0x462   :  { %1117 = vst.msk [vmem:[#allocation2] sm:$0xff] %vm241_vm2, %v775_v20  ;;  %v1394_v20 = vsel %vm133_vm0, %v3231_v19, 0 }
 0x463   :  { %v3006_v21 = vpop.f32.mrf.mxu0 }
 0x465   :  { %v778_v22 = vpop.f32.mrf.mxu0 }
 0x467   :  { %v3007_v23 = vpop.f32.mrf.mxu0 }
 0x469   :  { %v823_v26 = vpop.f32.mrf.mxu1 }
 0x46a   :  { %1118 = vst.msk [vmem:[#allocation2 + $0x8] sm:$0xff] %vm241_vm2, %v823_v26 }
 0x46b   :  { %v3012_v27 = vpop.f32.mrf.mxu1 }
 0x46d   :  { %v826_v28 = vpop.f32.mrf.mxu1 }
 0x46f   :  { %v3013_v37 = vpop.f32.mrf.mxu1 }
 0x4b1   :  { %v871_v29 = vpop.f32.mrf.mxu0 }
 0x4b2   :  { %1121 = vrot.lane.b32.xlu0 %v871_v29, %s3389_s25 }
 0x4b3   :  { %v3018_v40 = vpop.f32.mrf.mxu0 }
 0x4b5   :  { %v874_v30 = vpop.f32.mrf.mxu0 }
 0x4b7   :  { %v3019_v25 = vpop.f32.mrf.mxu0 }
 0x4b8   :  { %v79_v25 = vld [vmem:[%s4195_s26] sm:$0xff] }
 0x4b9   :  { %v919_v32 = vpop.f32.mrf.mxu1 }
 0x4ba   :  { %1123 = vrot.lane.b32.xlu1 %v919_v32, %s3389_s25  ;;  %v80_v32 = vld [vmem:[%s4195_s26 + $0x8] sm:$0xff] }
 0x4bb   :  { %v3024_v33 = vpop.f32.mrf.mxu1 }
 0x4bc   :  { %v1350_v33 = vpack.c.bf16 %v80_v32, %v79_v25 }
 0x4bd   :  { %v922_v35 = vpop.f32.mrf.mxu1 }
 0x4be   :  { %v81_v35 = vld [vmem:[%s4195_s26 + $0x10] sm:$0xff] }
 0x4bf   :  { %v3025_v36 = vpop.f32.mrf.mxu1 }
 0x4c0   :  { %v82_v36 = vld [vmem:[%s4195_s26 + $0x18] sm:$0xff] }
 0x4c1   :  { %v1351_v39 = vpack.c.bf16 %v82_v36, %v81_v35 }
 0x4ee   :  { %v1015_v43 = vpop.f32.mrf.mxu1 }
 0x4ef   :  { %1134 = vrot.lane.b32.xlu1 %v1015_v43, %s3390_s5  ;;  %v1307_v43 = vsel %vm133_vm0, %v3232_v41, 0 }
 0x4f0   :  { %v3036_v44 = vpop.f32.mrf.mxu1  ;;  %3059 = vmatpush3.bf16.xpose.msra.mxu1 %v1307_v43 }
 0x4f1   :  { %3060 = vmatprep.subr.bf16.mxu1 %v3382_v1  ;;  %v3233_v44 = vld [vmem:[%s4196_s28] sm:$0xff]   ;;  %s4198_s28 = smov 24  }
 0x4f2   :  { %v1018_v45 = vpop.f32.mrf.mxu1 }
 0x4f3   :  { %v1304_v45 = vsel %vm133_vm0, %v3233_v44, 0 }
 0x4f4   :  { %v3037_v47 = vpop.f32.mrf.mxu1 }
 0x4f6   :  { %v967_v49 = vpop.f32.mrf.mxu0  ;;  %v1111_v50 = vpop.f32.mrf.mxu1 }
 0x4f7   :  { %1145 = vrot.lane.b32.xlu1 %v1111_v50, %s4178_s27  ;;  %1132 = vrot.lane.b32.xlu0 %v967_v49, %s3390_s5 }
 0x4f8   :  { %v3030_v51 = vpop.f32.mrf.mxu0  ;;  %v3048_v52 = vpop.f32.mrf.mxu1  ;;  %3061 = vmatpush3.bf16.xpose.msra.mxu1 %v1304_v45 }
 0x4f9   :  { %3078 = vmatprep.subr.bf16.mxu1 %v3382_v1 }
 0x4fa   :  { %v970_v53 = vpop.f32.mrf.mxu0  ;;  %v1114_v38 = vpop.f32.mrf.mxu1 }
 0x4fb   :  { %v2789_v38 = vld [vmem:[%s4163_s16] ss:$0 sm:$0xff] }
 0x4fc   :  { %v3031_v42 = vpop.f32.mrf.mxu0  ;;  %v3049_v54 = vpop.f32.mrf.mxu1 }
 0x4fe   :  { %v1063_v55 = vpop.f32.mrf.mxu0 }
 0x4ff   :  { %1143 = vrot.lane.b32.xlu0 %v1063_v55, %s4178_s27 }
 0x500   :  { %v3042_v56 = vpop.f32.mrf.mxu0 }
 0x501   :  { %v2790_v56 = vld [vmem:[%s4164_s17] ss:$0 sm:$0xff] }
 0x502   :  { %v1066_v57 = vpop.f32.mrf.mxu0 }
 0x504   :  { %v3043_v58 = vpop.f32.mrf.mxu0 }
 0x524   :  { %v1122_v59 = vpop.permute.xlu0 %1121 }
 0x525   :  { %1128 = vst.msk [vmem:[#allocation2] sm:$0xff] %vm1127_vm4, %v1122_v59 }
 0x52c   :  { %v1124_v31 = vpop.permute.xlu1 %1123 }
 0x52d   :  { %1129 = vst.msk [vmem:[#allocation2 + $0x8] sm:$0xff] %vm1127_vm4, %v1124_v31 }
 0x561   :  { %v1135_v34 = vpop.permute.xlu1 %1134 }
 0x562   :  { %1140 = vst.msk [vmem:[#allocation2 + $0x8] sm:$0xff] %vm1138_vm5, %v1135_v34 }
 0x569   :  { %v1146_v60 = vpop.permute.xlu1 %1145  ;;  %v1133_v61 = vpop.permute.xlu0 %1132 }
 0x56a   :  { %1151 = vst.msk [vmem:[#allocation2 + $0x8] sm:$0xff] %vm1149_vm6, %v1146_v60  ;;  %v2795_v60 = vld [vmem:[%s4156_s9] ss:$0 sm:$0xff] }
 0x56b   :  { %1139 = vst.msk [vmem:[#allocation2] sm:$0xff] %vm1138_vm5, %v1133_v61 }
 0x571   :  { %v1144_v24 = vpop.permute.xlu0 %1143  ;;  %v1153_v63 = vld [vmem:[#allocation2 + $0x8] sm:$0xff] }
 0x572   :  { %1150 = vst.msk [vmem:[#allocation2] sm:$0xff] %vm1149_vm6, %v1144_v24 }
 0x579   :  { %v1152_v62 = vld [vmem:[#allocation2] sm:$0xff] }
 0x57a   :  { %v1154_v0 = vpack.c.bf16 %v1153_v63, %v1152_v62 }
 0x57c   :  { %3055 = vmatmul.mubr.msk.bf16.vlgmr.msra.gmra.mxu0 %vm133_vm0, %v1154_v0 }
 0x57d   :  { %3074 = vmatprep.mubr.msk.bf16.mxu0 %vm133_vm0, %v1350_v33 }
 0x63c   :  { %v1214_v3 = vpop.f32.mrf.mxu0 }
 0x63d   :  { %v1215_v4 = vadd.f32 %v2785_v2, %v1214_v3 }
 0x63e   :  { %v3056_v5 = vpop.f32.mrf.mxu0 }
 0x63f   :  { %v1231_v6 = vadd.f32 %v1215_v4, %v3559_v13  ;;  %v1403_v13 = vsel %vm133_vm0, %v3228_v16, 0 }
 0x640   :  { %v1217_v7 = vpop.f32.mrf.mxu0  ;;  %3067 = vmatpush3.bf16.xpose.msra.mxu0 %v1403_v13 }
 0x641   :  { %v1218_v8 = vadd.f32 %v2785_v2, %v1217_v7  ;;  %v1235_v9 = vsel %vm133_vm0, %v1231_v6, 0.0  ;;  %3203 = vmatprep.subr.msk.bf16.mxu0 %vm133_vm0, %v3229_v17  ;;  %v2791_v7 = vld [vmem:[%s4197_s1] ss:$0 sm:$0xff] }
 0x642   :  { %1236 = vadd.xlane.f32.xlu0 %v1235_v9  ;;  %v3057_v11 = vpop.f32.mrf.mxu0 }
 0x643   :  { %v1232_v12 = vadd.f32 %v1218_v8, %v3564_v14  ;;  %v1400_v14 = vsel %vm133_vm0, %v3229_v17, 0 }
 0x645   :  { %v1238_v15 = vsel %vm133_vm0, %v1232_v12, 0.0 }
 0x646   :  { %1239 = vadd.xlane.f32.xlu1 %v1238_v15 }
 0x648   :  { %3069 = vmatpush3.bf16.xpose.msra.mxu0 %v1400_v14 }
 0x649   :  { %3204 = vmatprep.subr.msk.bf16.mxu0 %vm133_vm0, %v3230_v18 }
 0x650   :  { %3071 = vmatpush3.bf16.xpose.msra.mxu0 %v1397_v10 }
 0x651   :  { %3205 = vmatprep.subr.msk.bf16.mxu0 %vm133_vm0, %v3231_v19 }
 0x658   :  { %3073 = vmatpush3.bf16.xpose.msra.mxu0 %v1394_v20 }
 0x659   :  { %3102 = vmatprep.subr.bf16.mxu0 %v3382_v1 }
 0x65f   :  { %3075 = vmatmul.mubr.msk.bf16.vlgmr.msra.gmra.mxu0 %vm133_vm0, %v1351_v39 }
 0x660   :  { %3104 = vmatprep.mubr.msk.bf16.mxu0 %vm3383_vm1, %v3382_v1 }
 0x6cb   :  { %v1237_v21 = vpop.xlane.xlu0 %1236 }
 0x6cc   :  { %v1242_v22 = vmul.f32 0.03125, %v1237_v21 }
 0x6ce   :  { %v1244_v23 = vsub.f32 %v1231_v6, %v1242_v22 }
 0x6cf   :  { %v1240_v26 = vpop.xlane.xlu1 %1239 }
 0x6d0   :  { %v1243_v27 = vmul.f32 0.03125, %v1240_v26  ;;  %v1246_v28 = vmul.f32 %v1244_v23, %v1244_v23 }
 0x6d2   :  { %v1245_v37 = vsub.f32 %v1232_v12, %v1243_v27  ;;  %v1248_v29 = vsel %vm133_vm0, %v1246_v28, 0.0 }
 0x6d3   :  { %1249 = vadd.xlane.f32.xlu0 %v1248_v29 }
 0x6d4   :  { %v1247_v40 = vmul.f32 %v1245_v37, %v1245_v37 }
 0x6d6   :  { %v1251_v30 = vsel %vm133_vm0, %v1247_v40, 0.0 }
 0x6d7   :  { %1252 = vadd.xlane.f32.xlu0 %v1251_v30 }
 0x71f   :  { %v3076_v34 = vpop.f32.mrf.mxu0 }
 0x720   :  { %v1448_v0 = vadd.f32 %v3076_v34, %v2795_v60 }
 0x721   :  { %v1439_v61 = vpop.f32.mrf.mxu0 }
 0x722   :  { %v1440_v62 = vadd.f32 %v2795_v60, %v1439_v61 }
 0x723   :  { %v3077_v24 = vpop.f32.mrf.mxu0 }
 0x724   :  { %v1451_v2 = vadd.f32 %v3077_v24, %v2795_v60 }
 0x725   :  { %v1442_v63 = vpop.f32.mrf.mxu0 }
 0x726   :  { %v1443_v3 = vadd.f32 %v2795_v60, %v1442_v63  ;;  %v3863_v5 = vpack.c.bf16 %v1451_v2, %v1448_v0 }
 0x728   :  { %v1479_v4 = vpack.c.bf16 %v1443_v3, %v1440_v62  ;;  %v1545_v18 = vsel %vm241_vm2, %v3863_v5, 0 }
 0x72a   :  { %1483 = vrot.lane.b32.xlu1 %v1479_v4, %s3385_s0  ;;  %v1499_v6 = vsel %vm241_vm2, %v1479_v4, 0 }
 0x72e   :  { %1485 = vrot.lane.b32.xlu1 %v3863_v5, %s3385_s0 }
 0x732   :  { %1489 = vrot.lane.b32.xlu1 %v3863_v5, %s3384_s29 }
 0x75c   :  { %v1250_v46 = vpop.xlane.xlu0 %1249 }
 0x75d   :  { %v1254_v47 = vmul.f32 0.03125, %v1250_v46 }
 0x75f   :  { %v1256_v48 = vadd.f32 1e-06, %v1254_v47 }
 0x760   :  { %v1253_v49 = vpop.xlane.xlu0 %1252 }
 0x761   :  { %3274 = vrsqrt.f32 %v1256_v48  ;;  %v1255_v50 = vmul.f32 0.03125, %v1253_v49 }
 0x763   :  { %v1257_v51 = vadd.f32 1e-06, %v1255_v50 }
 0x765   :  { %3276 = vrsqrt.f32 %v1257_v51 }
 0x76e   :  { %v3275_v52 = vpop.eup %3274 }
 0x76f   :  { %v1260_v53 = vmul.f32 %v3275_v52, %v1244_v23 }
 0x771   :  { %v1268_v55 = vmul.f32 %v2789_v38, %v1260_v53 }
 0x772   :  { %v3277_v42 = vpop.eup %3276 }
 0x773   :  { %v1261_v54 = vmul.f32 %v3277_v42, %v1245_v37  ;;  %v3851_v58 = vadd.f32 %v2790_v56, %v1268_v55 }
 0x775   :  { %v1269_v57 = vmul.f32 %v2789_v38, %v1261_v54 }
 0x777   :  { %v3853_v59 = vadd.f32 %v2790_v56, %v1269_v57 }
 0x779   :  { %v1278_v31 = vpack.c.bf16 %v3853_v59, %v3851_v58 }
 0x77b   :  { %3063 = vmatmul.mubr.msk.bf16.vlgmr.msra.gmra.mxu1 %vm133_vm0, %v1278_v31 }
 0x77c   :  { %3080 = vmatprep.mubr.msk.bf16.mxu1 %vm3383_vm1, %v3382_v1  ;;  %3079 = vmatpush3.bf16.xpose.msra.mxu1 %v1499_v6 }
 0x77d   :  { %3084 = vmatprep.subr.bf16.mxu1 %v3382_v1 }
 0x79c   :  { %v3884_v19 = vpop.permute.xlu1 %1483 }
 0x79d   :  { %v1591_v20 = vsel %vm241_vm2, %v3884_v19, 0 }
 0x7a0   :  { %v3900_v21 = vpop.permute.xlu1 %1485 }
 0x7a1   :  { %v1637_v26 = vsel %vm241_vm2, %v3900_v21, 0 }
 0x7a4   :  { %v3902_v22 = vpop.permute.xlu1 %1489 }
 0x7a5   :  { %v1729_v30 = vsel %vm241_vm2, %v3902_v22, 0 }
 0x83b   :  { %v1343_v8 = vpop.f32.mrf.mxu1 }
 0x83c   :  { %v1344_v9 = vadd.f32 %v2791_v7, %v1343_v8 }
 0x83d   :  { %v3064_v11 = vpop.f32.mrf.mxu1 }
 0x83e   :  { %v1459_v12 = vmul.f32 0.35355338, %v1344_v9 }
 0x83f   :  { %v1346_v15 = vpop.f32.mrf.mxu1 }
 0x840   :  { %v2842_v16 = vpack.c.bf16 %v1459_v12, %v1459_v12  ;;  %v1347_v17 = vadd.f32 %v2791_v7, %v1346_v15 }
 0x841   :  { %v3065_v13 = vpop.f32.mrf.mxu1 }
 0x842   :  { %v1460_v14 = vmul.f32 0.35355338, %v1347_v17  ;;  %1467 = vrot.lane.b32.xlu0 %v2842_v16, %s3385_s0  ;;  %3081 = vmatmul.mubr.msk.bf16.vlgmr.msra.gmra.mxu1 %vm241_vm2, %v2842_v16 }
 0x843   :  { %3085 = vmatpush3.bf16.xpose.msra.mxu1 %v1545_v18  ;;  %3086 = vmatprep.mubr.msk.bf16.mxu1 %vm3383_vm1, %v3382_v1 }
 0x844   :  { %v2843_v10 = vpack.c.bf16 %v1460_v14, %v1460_v14  ;;  %3090 = vmatprep.subr.bf16.mxu1 %v3382_v1 }
 0x846   :  { %1487 = vrot.lane.b32.xlu0 %v1479_v4, %s3384_s29  ;;  %1469 = vrot.lane.b32.xlu1 %v2843_v10, %s3385_s0 }
 0x84a   :  { %1471 = vrot.lane.b32.xlu0 %v2842_v16, %s3384_s29  ;;  %1473 = vrot.lane.b32.xlu1 %v2843_v10, %s3384_s29 }
 0x84b   :  { %3087 = vmatmul.mubr.msk.bf16.vlgmr.msra.gmra.mxu1 %vm241_vm2, %v2843_v10 }
 0x84c   :  { %3091 = vmatpush3.bf16.xpose.msra.mxu1 %v1591_v20  ;;  %3092 = vmatprep.mubr.msk.bf16.mxu1 %vm3383_vm1, %v3382_v1 }
 0x84d   :  { %3096 = vmatprep.subr.bf16.mxu1 %v3382_v1 }
 0x84e   :  { %1491 = vrot.lane.b32.xlu0 %v1479_v4, %s3386_s7  ;;  %1493 = vrot.lane.b32.xlu1 %v3863_v5, %s3386_s7 }
 0x852   :  { %1475 = vrot.lane.b32.xlu0 %v2842_v16, %s3386_s7  ;;  %1477 = vrot.lane.b32.xlu1 %v2843_v10, %s3386_s7 }
 0x856   :  { %1960 = vrot.lane.b32.xlu1 %v1479_v4, %s3387_s30 }
 0x8b4   :  { %v1468_v23 = vpop.permute.xlu0 %1467 }
 0x8b5   :  { %3093 = vmatmul.mubr.msk.bf16.vlgmr.msra.gmra.mxu1 %vm241_vm2, %v1468_v23 }
 0x8b6   :  { %3097 = vmatpush3.bf16.xpose.msra.mxu1 %v1637_v26  ;;  %3098 = vmatprep.mubr.msk.bf16.mxu1 %vm3383_vm1, %v3382_v1 }
 0x8b7   :  { %3108 = vmatprep.subr.bf16.mxu1 %v3382_v1 }
 0x8b8   :  { %v3910_v27 = vpop.permute.xlu0 %1487  ;;  %v1470_v28 = vpop.permute.xlu1 %1469 }
 0x8b9   :  { %v1683_v37 = vsel %vm241_vm2, %v3910_v27, 0 }
 0x8ba   :  { %3103 = vmatpush3.bf16.xpose.msra.mxu0 %v1683_v37 }
 0x8bb   :  { %3114 = vmatprep.subr.bf16.mxu0 %v3382_v1 }
 0x8bc   :  { %v1472_v29 = vpop.permute.xlu0 %1471  ;;  %v1474_v40 = vpop.permute.xlu1 %1473 }
 0x8bd   :  { %3099 = vmatmul.mubr.msk.bf16.vlgmr.msra.gmra.mxu1 %vm241_vm2, %v1470_v28 }
 0x8be   :  { %3109 = vmatpush3.bf16.xpose.msra.mxu1 %v1729_v30  ;;  %3110 = vmatprep.mubr.msk.bf16.mxu1 %vm3383_vm1, %v3382_v1 }
 0x8bf   :  { %3120 = vmatprep.subr.bf16.mxu1 %v3382_v1 }
 0x8c0   :  { %v3921_v25 = vpop.permute.xlu0 %1491  ;;  %v3923_v32 = vpop.permute.xlu1 %1493 }
 0x8c1   :  { %v1775_v33 = vsel %vm241_vm2, %v3921_v25, 0  ;;  %3105 = vmatmul.mubr.msk.bf16.vlgmr.msra.gmra.mxu0 %vm241_vm2, %v1472_v29  ;;  %v1821_v36 = vsel %vm241_vm2, %v3923_v32, 0 }
 0x8c2   :  { %3115 = vmatpush3.bf16.xpose.msra.mxu0 %v1775_v33  ;;  %3116 = vmatprep.mubr.msk.bf16.mxu0 %vm3383_vm1, %v3382_v1 }
 0x8c3   :  { %3126 = vmatprep.subr.bf16.mxu0 %v3382_v1 }
 0x8c4   :  { %v1478_v35 = vpop.permute.xlu1 %1477  ;;  %v1476_v39 = vpop.permute.xlu0 %1475 }
 0x8c5   :  { %3111 = vmatmul.mubr.msk.bf16.vlgmr.msra.gmra.mxu1 %vm241_vm2, %v1474_v40 }
 0x8c6   :  { %3121 = vmatpush3.bf16.xpose.msra.mxu1 %v1821_v36  ;;  %3122 = vmatprep.mubr.msk.bf16.mxu1 %vm3383_vm1, %v3382_v1 }
 0x8c7   :  { %3132 = vmatprep.subr.bf16.mxu1 %v3382_v1 }
 0x8c8   :  { %v1961_v41 = vpop.permute.xlu1 %1960 }
 0x8c9   :  { %3117 = vmatmul.mubr.msk.bf16.vlgmr.msra.gmra.mxu0 %vm241_vm2, %v1476_v39 }
 0x8ca   :  { %3127 = vmatpush3.bf16.msra.mxu0 %v1961_v41  ;;  %3128 = vmatprep.mubr.msk.bf16.mxu0 %vm3383_vm1, %v3382_v1 }
 0x8cb   :  { %3138 = vmatprep.subr.bf16.mxu0 %v3382_v1 }
 0x8cd   :  { %3123 = vmatmul.mubr.msk.bf16.vlgmr.msra.gmra.mxu1 %vm241_vm2, %v1478_v35 }
 0x8ce   :  { %3134 = vmatprep.mubr.msk.bf16.mxu1 %vm3383_vm1, %v3382_v1 }
 0x902   :  { %v1535_v43 = vpop.f32.mrf.mxu1 }
 0x903   :  { %v1864_v44 = vsel %vm1863_vm7, %v1535_v43, -inf }
 0x904   :  { %1865 = vmax.xlane.f32.xlu0 %v1864_v44  ;;  %v3082_v45 = vpop.f32.mrf.mxu1 }
 0x906   :  { %v1538_v46 = vpop.f32.mrf.mxu1 }
 0x908   :  { %v3083_v47 = vpop.f32.mrf.mxu1 }
 0x90b   :  { %v1581_v48 = vpop.f32.mrf.mxu1 }
 0x90c   :  { %v1867_v49 = vsel %vm1863_vm7, %v1581_v48, -inf }
 0x90d   :  { %1868 = vmax.xlane.f32.xlu1 %v1867_v49  ;;  %v3088_v50 = vpop.f32.mrf.mxu1 }
 0x90f   :  { %v1584_v51 = vpop.f32.mrf.mxu1 }
 0x911   :  { %v3089_v52 = vpop.f32.mrf.mxu1 }
 0x975   :  { %v1627_v53 = vpop.f32.mrf.mxu1 }
 0x976   :  { %v1870_v38 = vsel %vm1863_vm7, %v1627_v53, -inf }
 0x977   :  { %1871 = vmax.xlane.f32.xlu0 %v1870_v38  ;;  %v3094_v42 = vpop.f32.mrf.mxu1 }
 0x979   :  { %v1630_v54 = vpop.f32.mrf.mxu1 }
 0x97b   :  { %v3095_v55 = vpop.f32.mrf.mxu1 }
 0x97d   :  { %v1673_v56 = vpop.f32.mrf.mxu1 }
 0x97e   :  { %v1873_v57 = vsel %vm1863_vm7, %v1673_v56, -inf }
 0x97f   :  { %1874 = vmax.xlane.f32.xlu0 %v1873_v57  ;;  %v3100_v31 = vpop.f32.mrf.mxu1 }
 0x981   :  { %v1676_v34 = vpop.f32.mrf.mxu1  ;;  %v1719_v60 = vpop.f32.mrf.mxu0 }
 0x982   :  { %v1876_v61 = vsel %vm1863_vm7, %v1719_v60, -inf }
 0x983   :  { %v3106_v24 = vpop.f32.mrf.mxu0  ;;  %1877 = vmax.xlane.f32.xlu1 %v1876_v61  ;;  %v3101_v62 = vpop.f32.mrf.mxu1 }
 0x985   :  { %v1722_v63 = vpop.f32.mrf.mxu0  ;;  %v3949_v0 = vpop.f32.mrf.mxu1 }
 0x986   :  { %v1879_v2 = vsel %vm1863_vm7, %v3949_v0, -inf }
 0x987   :  { %v3107_v3 = vpop.f32.mrf.mxu0  ;;  %1880 = vmax.xlane.f32.xlu0 %v1879_v2  ;;  %v3112_v4 = vpop.f32.mrf.mxu1 }
 0x989   :  { %v1768_v6 = vpop.f32.mrf.mxu1  ;;  %v3953_v7 = vpop.f32.mrf.mxu0 }
 0x98a   :  { %v1882_v8 = vsel %vm1863_vm7, %v3953_v7, -inf }
 0x98b   :  { %v3118_v9 = vpop.f32.mrf.mxu0  ;;  %1883 = vmax.xlane.f32.xlu1 %v1882_v8  ;;  %v3113_v11 = vpop.f32.mrf.mxu1 }
 0x98d   :  { %v1814_v12 = vpop.f32.mrf.mxu0  ;;  %v1857_v15 = vpop.f32.mrf.mxu1 }
 0x98e   :  { %v1885_v17 = vsel %vm1863_vm7, %v1857_v15, -inf  ;;  %v1866_v10 = vpop.xlane.xlu0 %1865 }
 0x98f   :  { %v3119_v16 = vpop.f32.mrf.mxu0  ;;  %1886 = vmax.xlane.f32.xlu0 %v1885_v17  ;;  %v3124_v13 = vpop.f32.mrf.mxu1  ;;  %v1888_v23 = vsub.f32 %v1535_v43, %v1866_v10 }
 0x991   :  { %v1860_v14 = vpop.f32.mrf.mxu1  ;;  %v1896_v28 = vmul.f32 1.442695, %v1888_v23 }
 0x993   :  { %v3125_v18 = vpop.f32.mrf.mxu1  ;;  %3278 = vpow2.f32 %v1896_v28 }
 0x996   :  { %v1869_v20 = vpop.xlane.xlu1 %1868 }
 0x997   :  { %v1889_v26 = vsub.f32 %v1581_v48, %v1869_v20 }
 0x999   :  { %v1898_v37 = vmul.f32 1.442695, %v1889_v26 }
 0x99b   :  { %3280 = vpow2.f32 %v1898_v37 }
 0x99c   :  { %2052 = vrot.lane.b32.xlu1 %v3884_v19, %s3387_s30 }
 0x9a0   :  { %2098 = vrot.lane.b32.xlu1 %v3900_v21, %s3387_s30  ;;  %v3279_v29 = vpop.eup %3278 }
 0x9a1   :  { %v1912_v30 = vsel %vm1863_vm7, %v3279_v29, 0.0 }
 0x9a5   :  { %2006 = vrot.lane.b32.xlu0 %v3863_v5, %s3387_s30 }
 0x9a8   :  { %v3281_v40 = vpop.eup %3280 }
 0x9a9   :  { %v1915_v19 = vsel %vm1863_vm7, %v3281_v40, 0.0 }
 0x9c4   :  { %1913 = vadd.xlane.f32.xlu1 %v1912_v30  ;;  %1916 = vadd.xlane.f32.xlu0 %v1915_v19 }
 0xa00   :  { %v1872_v21 = vpop.xlane.xlu0 %1871 }
 0xa01   :  { %v1890_v33 = vsub.f32 %v1627_v53, %v1872_v21 }
 0xa03   :  { %v1900_v35 = vmul.f32 1.442695, %v1890_v33 }
 0xa05   :  { %3282 = vpow2.f32 %v1900_v35 }
 0xa08   :  { %v1875_v5 = vpop.xlane.xlu0 %1874 }
 0xa09   :  { %v1891_v36 = vsub.f32 %v1673_v56, %v1875_v5 }
 0xa0b   :  { %v1902_v39 = vmul.f32 1.442695, %v1891_v36 }
 0xa0c   :  { %v1878_v41 = vpop.xlane.xlu1 %1877 }
 0xa0d   :  { %3284 = vpow2.f32 %v1902_v39  ;;  %v1892_v43 = vsub.f32 %v1719_v60, %v1878_v41 }
 0xa0f   :  { %v1904_v44 = vmul.f32 1.442695, %v1892_v43 }
 0xa10   :  { %v1881_v47 = vpop.xlane.xlu0 %1880 }
 0xa11   :  { %3286 = vpow2.f32 %v1904_v44  ;;  %v1893_v38 = vsub.f32 %v3949_v0, %v1881_v47 }
 0xa12   :  { %v3966_v45 = vpop.eup %3282 }
 0xa13   :  { %v1918_v46 = vsel %vm1863_vm7, %v3966_v45, 0.0  ;;  %v1906_v55 = vmul.f32 1.442695, %v1893_v38 }
 0xa14   :  { %1919 = vadd.xlane.f32.xlu1 %v1918_v46  ;;  %v1884_v42 = vpop.xlane.xlu1 %1883 }
 0xa15   :  { %v1894_v54 = vsub.f32 %v3953_v7, %v1884_v42  ;;  %3288 = vpow2.f32 %v1906_v55 }
 0xa17   :  { %v1908_v57 = vmul.f32 1.442695, %v1894_v54 }
 0xa18   :  { %v1887_v48 = vpop.xlane.xlu0 %1886  ;;  %v2053_v34 = vpop.permute.xlu1 %2052 }
 0xa19   :  { %v1895_v56 = vsub.f32 %v1857_v15, %v1887_v48  ;;  %3290 = vpow2.f32 %v1908_v57 }
 0xa1a   :  { %v3970_v49 = vpop.eup %3284 }
 0xa1b   :  { %v1921_v50 = vsel %vm1863_vm7, %v3970_v49, 0.0  ;;  %v1910_v31 = vmul.f32 1.442695, %v1895_v56 }
 0xa1c   :  { %1922 = vadd.xlane.f32.xlu0 %v1921_v50  ;;  %v2007_v51 = vpop.permute.xlu0 %2006  ;;  %v2099_v60 = vpop.permute.xlu1 %2098 }
 0xa1d   :  { %3133 = vmatpush3.bf16.msra.mxu1 %v2007_v51  ;;  %3292 = vpow2.f32 %v1910_v31 }
 0xa1e   :  { %v3974_v52 = vpop.eup %3286  ;;  %3144 = vmatprep.subr.bf16.mxu1 %v3382_v1 }
 0xa1f   :  { %v1924_v53 = vsel %vm1863_vm7, %v3974_v52, 0.0 }
 0xa20   :  { %1925 = vadd.xlane.f32.xlu1 %v1924_v53 }
 0xa22   :  { %v3985_v61 = vpop.eup %3288 }
 0xa23   :  { %v1927_v62 = vsel %vm1863_vm7, %v3985_v61, 0.0 }
 0xa31   :  { %2190 = vrot.lane.b32.xlu1 %v3902_v22, %s3387_s30 }
 0xa32   :  { %2144 = vrot.lane.b32.xlu0 %v3910_v27, %s3387_s30  ;;  %v3987_v27 = vpop.eup %3290 }
 0xa33   :  { %v3991_v63 = vpop.eup %3292  ;;  %v1930_v0 = vsel %vm1863_vm7, %v3987_v27, 0.0 }
 0xa34   :  { %v1933_v2 = vsel %vm1863_vm7, %v3991_v63, 0.0 }
 0xa4d   :  { %v1914_v22 = vpop.xlane.xlu1 %1913  ;;  %v1917_v24 = vpop.xlane.xlu0 %1916 }
 0xa4e   :  { %3294 = vrcp.f32 %v1914_v22 }
 0xa4f   :  { %3296 = vrcp.f32 %v1917_v24 }
 0xa51   :  { %1928 = vadd.xlane.f32.xlu0 %v1927_v62 }
 0xa55   :  { %1931 = vadd.xlane.f32.xlu1 %v1930_v0  ;;  %1934 = vadd.xlane.f32.xlu0 %v1933_v2 }
 0xa5b   :  { %v3295_v3 = vpop.eup %3294 }
 0xa5c   :  { %v3297_v4 = vpop.eup %3296  ;;  %v1944_v6 = vmul.f32 %v3295_v3, %v3279_v29 }
 0xa5d   :  { %v1945_v7 = vmul.f32 %v3297_v4, %v3281_v40  ;;  %v3234_v4 = vld [vmem:[%s4157_s10 + $0x8] sm:$0xff]  }
 0xa5e   :  { %v1952_v8 = vpack.c.bf16 %v1944_v6, %v1944_v6 }
 0xa5f   :  { %v1953_v9 = vpack.c.bf16 %v1945_v7, %v1945_v7 }
 0xa60   :  { %3129 = vmatmul.mubr.msk.bf16.vlgmr.msra.gmra.mxu0 %vm1863_vm7, %v1952_v8 }
 0xa61   :  { %3135 = vmatmul.mubr.msk.bf16.vlgmr.msra.gmra.mxu1 %vm1863_vm7, %v1953_v9  ;;  %3139 = vmatpush3.bf16.msra.mxu0 %v2053_v34 }
 0xa62   :  { %3145 = vmatpush3.bf16.msra.mxu1 %v2099_v60  ;;  %3140 = vmatprep.mubr.msk.bf16.mxu0 %vm3383_vm1, %v3382_v1 }
 0xa63   :  { %3150 = vmatprep.subr.bf16.mxu0 %v3382_v1  ;;  %3146 = vmatprep.mubr.msk.bf16.mxu1 %vm3383_vm1, %v3382_v1 }
 0xa64   :  { %3156 = vmatprep.subr.bf16.mxu1 %v3382_v1 }
 0xa66   :  { %2282 = vrot.lane.b32.xlu1 %v3923_v32, %s3387_s30 }
 0xa6b   :  { %2236 = vrot.lane.b32.xlu0 %v3921_v25, %s3387_s30 }
 0xa9d   :  { %v1920_v11 = vpop.xlane.xlu1 %1919 }
 0xa9e   :  { %3298 = vrcp.f32 %v1920_v11 }
 0xaa5   :  { %v1923_v12 = vpop.xlane.xlu0 %1922 }
 0xaa6   :  { %3300 = vrcp.f32 %v1923_v12 }
 0xaa9   :  { %v1926_v15 = vpop.xlane.xlu1 %1925  ;;  %v2145_v14 = vpop.permute.xlu0 %2144 }
 0xaaa   :  { %3302 = vrcp.f32 %v1926_v15 }
 0xaab   :  { %v3299_v16 = vpop.eup %3298 }
 0xaac   :  { %v1946_v17 = vmul.f32 %v3299_v16, %v3966_v45 }
 0xaad   :  { %v2191_v20 = vpop.permute.xlu1 %2190 }
 0xaae   :  { %v1954_v13 = vpack.c.bf16 %v1946_v17, %v1946_v17  ;;  %v2431_v33 = vadd.f32 %v1946_v17, %v1944_v6  ;;  %v2386_v6 = vsel %vm133_vm0, %v3234_v4, 0 }
 0xab0   :  { %3141 = vmatmul.mubr.msk.bf16.vlgmr.msra.gmra.mxu0 %vm1863_vm7, %v1954_v13 }
 0xab1   :  { %3151 = vmatpush3.bf16.msra.mxu0 %v2145_v14  ;;  %3152 = vmatprep.mubr.msk.bf16.mxu0 %vm3383_vm1, %v3382_v1 }
 0xab2   :  { %3162 = vmatprep.subr.bf16.mxu0 %v3382_v1 }
 0xab3   :  { %v3301_v25 = vpop.eup %3300 }
 0xab4   :  { %v1947_v32 = vmul.f32 %v3301_v25, %v3970_v49 }
 0xab6   :  { %v1955_v18 = vpack.c.bf16 %v1947_v32, %v1947_v32  ;;  %v2432_v5 = vadd.f32 %v1947_v32, %v1945_v7  ;;  %v3235_v7 = vld [vmem:[%s4157_s10] sm:$0xff]  }
 0xab7   :  { %v3303_v10 = vpop.eup %3302  ;;  %v2383_v8 = vsel %vm133_vm0, %v3235_v7, 0 }
 0xab8   :  { %3147 = vmatmul.mubr.msk.bf16.vlgmr.msra.gmra.mxu1 %vm1863_vm7, %v1955_v18  ;;  %v1948_v23 = vmul.f32 %v3303_v10, %v3974_v52 }
 0xab9   :  { %3157 = vmatpush3.bf16.msra.mxu1 %v2191_v20  ;;  %3158 = vmatprep.mubr.msk.bf16.mxu1 %vm3383_vm1, %v3382_v1 }
 0xaba   :  { %v1956_v26 = vpack.c.bf16 %v1948_v23, %v1948_v23  ;;  %3168 = vmatprep.subr.bf16.mxu1 %v3382_v1  ;;  %v2433_v43 = vadd.f32 %v2431_v33, %v1948_v23 }
 0xabc   :  { %3153 = vmatmul.mubr.msk.bf16.vlgmr.msra.gmra.mxu0 %vm1863_vm7, %v1956_v26 }
 0xabd   :  { %3164 = vmatprep.mubr.msk.bf16.mxu0 %vm3383_vm1, %v3382_v1 }
 0xada   :  { %v1929_v28 = vpop.xlane.xlu0 %1928 }
 0xadb   :  { %3304 = vrcp.f32 %v1929_v28 }
 0xade   :  { %v1932_v37 = vpop.xlane.xlu1 %1931  ;;  %v1935_v29 = vpop.xlane.xlu0 %1934 }
 0xadf   :  { %3306 = vrcp.f32 %v1932_v37 }
 0xae0   :  { %3308 = vrcp.f32 %v1935_v29 }
 0xae2   :  { %v2237_v40 = vpop.permute.xlu0 %2236  ;;  %v2283_v39 = vpop.permute.xlu1 %2282 }
 0xae3   :  { %3163 = vmatpush3.bf16.msra.mxu0 %v2237_v40 }
 0xae4   :  { %3174 = vmatprep.subr.bf16.mxu0 %v3382_v1 }
 0xae8   :  { %v3305_v30 = vpop.eup %3304 }
 0xae9   :  { %v1949_v19 = vmul.f32 %v3305_v30, %v3985_v61 }
 0xaeb   :  { %v1957_v21 = vpack.c.bf16 %v1949_v19, %v1949_v19  ;;  %v2434_v45 = vadd.f32 %v2432_v5, %v1949_v19 }
 0xaec   :  { %v3307_v35 = vpop.eup %3306 }
 0xaed   :  { %v3309_v36 = vpop.eup %3308  ;;  %3159 = vmatmul.mubr.msk.bf16.vlgmr.msra.gmra.mxu1 %vm1863_vm7, %v1957_v21  ;;  %v1950_v41 = vmul.f32 %v3307_v35, %v3987_v27  ;;  %v2820_v21 = vld [vmem:[%s4158_s11] ss:$0 sm:$0xff] }
 0xaee   :  { %3169 = vmatpush3.bf16.msra.mxu1 %v2283_v39  ;;  %3170 = vmatprep.mubr.msk.bf16.mxu1 %vm3383_vm1, %v3382_v1  ;;  %v1951_v44 = vmul.f32 %v3309_v36, %v3991_v63 }
 0xaef   :  { %v1958_v46 = vpack.c.bf16 %v1950_v41, %v1950_v41  ;;  %3182 = vmatprep.subr.bf16.mxu1 %v3382_v1  ;;  %v2435_v47 = vadd.f32 %v2433_v43, %v1950_v41 }
 0xaf0   :  { %v2436_v48 = vadd.f32 %v2434_v45, %v1951_v44  ;;  %v1959_v51 = vpack.c.bf16 %v1951_v44, %v1951_v44 }
 0xaf1   :  { %3165 = vmatmul.mubr.msk.bf16.vlgmr.msra.gmra.mxu0 %vm1863_vm7, %v1958_v46  ;;  %v2437_v49 = vmul.f32 0.25, %v2435_v47  ;;  %v3236_v47 = vld [vmem:[%s4159_s12 + $0x18] sm:$0xff]  }
 0xaf2   :  { %3178 = vmatprep.mubr.msk.bf16.mxu0 %vm3383_vm1, %v3382_v1  ;;  %v2438_v50 = vmul.f32 0.25, %v2436_v48  ;;  %3175 = vmatpush3.bf16.xpose.msra.mxu0 %v2386_v6  ;;  %v2534_v48 = vsel %vm133_vm0, %v3236_v47, 0  ;;  %v2824_v6 = vld [vmem:[%s4165_s18] ss:$0 sm:$0xff] }
 0xaf3   :  { %2702 = vst.msk [vmem:[#allocation7] sm:$0xff] %vm1863_vm7, %v2437_v49  ;;  %3176 = vmatprep.subr.bf16.mxu0 %v3382_v1 }
 0xaf4   :  { %2703 = vst.msk [vmem:[#allocation7 + $0x8] sm:$0xff] %vm1863_vm7, %v2438_v50 }
 0xaf5   :  { %3171 = vmatmul.mubr.msk.bf16.vlgmr.msra.gmra.mxu1 %vm1863_vm7, %v1959_v51 }
 0xaf6   :  { %3190 = vmatprep.mubr.msk.bf16.mxu1 %vm3383_vm1, %v3382_v1  ;;  %3183 = vmatpush3.bf16.xpose.msra.mxu1 %v2534_v48 }
 0xaf7   :  { %3184 = vmatprep.subr.bf16.mxu1 %v3382_v1 }
 0xafa   :  { %3177 = vmatpush3.bf16.xpose.msra.mxu0 %v2383_v8 }
 0xafb   :  { %3194 = vmatprep.subr.bf16.mxu0 %v3382_v1 }
 0xb20   :  { %v2000_v52 = vpop.f32.mrf.mxu0 }
 0xb21   :  { %2328 = vst.msk [vmem:[#allocation2] sm:$0xff] %vm241_vm2, %v2000_v52  ;;  %v2046_v53 = vpop.f32.mrf.mxu1 }
 0xb22   :  { %2329 = vst.msk [vmem:[#allocation2 + $0x8] sm:$0xff] %vm241_vm2, %v2046_v53  ;;  %v3130_v38 = vpop.f32.mrf.mxu0 }
 0xb23   :  { %v3136_v42 = vpop.f32.mrf.mxu1 }
 0xb24   :  { %v2003_v54 = vpop.f32.mrf.mxu0 }
 0xb25   :  { %v2049_v55 = vpop.f32.mrf.mxu1 }
 0xb26   :  { %v3131_v56 = vpop.f32.mrf.mxu0  ;;  %v3237_v55 = vld [vmem:[%s4159_s12 + $0x10] sm:$0xff]  }
 0xb27   :  { %v3137_v57 = vpop.f32.mrf.mxu1  ;;  %v2531_v56 = vsel %vm133_vm0, %v3237_v55, 0 }
 0xb28   :  { %3185 = vmatpush3.bf16.xpose.msra.mxu1 %v2531_v56  ;;  %v3238_v57 = vld [vmem:[%s4159_s12 + $0x8] sm:$0xff]  }
 0xb29   :  { %3186 = vmatprep.subr.bf16.mxu1 %v3382_v1 }
 0xb70   :  { %v2092_v31 = vpop.f32.mrf.mxu0 }
 0xb71   :  { %2332 = vrot.lane.b32.xlu0 %v2092_v31, %s3389_s25  ;;  %v2528_v31 = vsel %vm133_vm0, %v3238_v57, 0 }
 0xb72   :  { %v3142_v34 = vpop.f32.mrf.mxu0  ;;  %3187 = vmatpush3.bf16.xpose.msra.mxu1 %v2528_v31 }
 0xb73   :  { %3188 = vmatprep.subr.bf16.mxu1 %v3382_v1  ;;  %v3239_v34 = vld [vmem:[%s4159_s12] sm:$0xff]  }
 0xb74   :  { %v2095_v60 = vpop.f32.mrf.mxu0 }
 0xb75   :  { %v2525_v60 = vsel %vm133_vm0, %v3239_v34, 0 }
 0xb76   :  { %v3143_v61 = vpop.f32.mrf.mxu0 }
 0xb77   :  { %v3240_v61 = vld [vmem:[%s4161_s14 + $0x8] sm:$0xff]  }
 0xb78   :  { %v2138_v22 = vpop.f32.mrf.mxu1 }
 0xb79   :  { %2334 = vrot.lane.b32.xlu1 %v2138_v22, %s3389_s25  ;;  %v2609_v22 = vsel %vm2601_vm8, %v3240_v61, 0 }
 0xb7a   :  { %v3148_v24 = vpop.f32.mrf.mxu1  ;;  %3189 = vmatpush3.bf16.xpose.msra.mxu1 %v2525_v60 }
 0xb7c   :  { %v2141_v27 = vpop.f32.mrf.mxu1  ;;  %v2184_v62 = vpop.f32.mrf.mxu0 }
 0xb7d   :  { %2342 = vrot.lane.b32.xlu0 %v2184_v62, %s3390_s5 }
 0xb7e   :  { %v3149_v63 = vpop.f32.mrf.mxu1  ;;  %v3154_v0 = vpop.f32.mrf.mxu0 }
 0xb80   :  { %v2187_v2 = vpop.f32.mrf.mxu0 }
 0xb82   :  { %v3155_v3 = vpop.f32.mrf.mxu0 }
 0xbad   :  { %v2230_v9 = vpop.f32.mrf.mxu1 }
 0xbae   :  { %2344 = vrot.lane.b32.xlu1 %v2230_v9, %s3390_s5 }
 0xbaf   :  { %v3160_v11 = vpop.f32.mrf.mxu1 }
 0xbb1   :  { %v2233_v12 = vpop.f32.mrf.mxu1  ;;  %v2276_v15 = vpop.f32.mrf.mxu0 }
 0xbb2   :  { %2352 = vrot.lane.b32.xlu0 %v2276_v15, %s4198_s28 }
 0xbb3   :  { %v3161_v16 = vpop.f32.mrf.mxu1  ;;  %v3166_v17 = vpop.f32.mrf.mxu0 }
 0xbb4   :  { %v3241_v17 = vld [vmem:[%s4161_s14] sm:$0xff]  }
 0xbb5   :  { %v2279_v13 = vpop.f32.mrf.mxu0  ;;  %v2322_v14 = vpop.f32.mrf.mxu1 }
 0xbb6   :  { %2354 = vrot.lane.b32.xlu1 %v2322_v14, %s4198_s28  ;;  %v2606_v13 = vsel %vm2601_vm8, %v3241_v17, 0  ;;  %v2826_v14 = vld [vmem:[%s4160_s13] ss:$0 sm:$0xff]  ;;  %s3392_s13 = smov [#allocation5]  }
 0xbb7   :  { %v3167_v25 = vpop.f32.mrf.mxu0  ;;  %v3172_v32 = vpop.f32.mrf.mxu1 }
 0xbb9   :  { %v2325_v18 = vpop.f32.mrf.mxu1 }
 0xbbb   :  { %v3173_v10 = vpop.f32.mrf.mxu1 }
 0xbe3   :  { %v2333_v20 = vpop.permute.xlu0 %2332 }
 0xbe4   :  { %2338 = vst.msk [vmem:[#allocation2] sm:$0xff] %vm1127_vm4, %v2333_v20 }
 0xbeb   :  { %v2335_v23 = vpop.permute.xlu1 %2334 }
 0xbec   :  { %2339 = vst.msk [vmem:[#allocation2 + $0x8] sm:$0xff] %vm1127_vm4, %v2335_v23 }
 0xbef   :  { %v2343_v26 = vpop.permute.xlu0 %2342 }
 0xbf0   :  { %2348 = vst.msk [vmem:[#allocation2] sm:$0xff] %vm1138_vm5, %v2343_v26 }
 0xc20   :  { %v2345_v28 = vpop.permute.xlu1 %2344 }
 0xc21   :  { %2349 = vst.msk [vmem:[#allocation2 + $0x8] sm:$0xff] %vm1138_vm5, %v2345_v28 }
 0xc24   :  { %v2353_v37 = vpop.permute.xlu0 %2352 }
 0xc25   :  { %2358 = vst.msk [vmem:[#allocation2] sm:$0xff] %vm1149_vm6, %v2353_v37 }
 0xc28   :  { %v2355_v29 = vpop.permute.xlu1 %2354 }
 0xc29   :  { %2359 = vst.msk [vmem:[#allocation2 + $0x8] sm:$0xff] %vm1149_vm6, %v2355_v29  ;;  %v2832_v29 = vld [vmem:[%s4162_s15] ss:$0 sm:$0xff]  ;;  %s2721_s15 = sshll.u32 %s3392_s13, 4  ;;  %s2722_s15 = int_to_ptr.vmem [resolvable:$true] %s2721_s15 }
 0xc2a   :  { %s3318_s28 = scalar_lea.vmem %s2722_s15, 256  ;;  %p3323_p1 = scmp.lt.s32.totalorder %s2722_s15, %s2722_s15 }
 0xc2b   :  { %p3319_p0 = scmp.ne.s32.totalorder %s2722_s15, %s3318_s28  ;;  %p3324_p2 = scmp.lt.s32.totalorder %s3318_s28, %s3318_s28 }
 0xc2c   :  { %v2360_v40 = vld [vmem:[#allocation2] sm:$0xff] }
 0xc2d   :  { %p3325_p3 = por %p3324_p2, %p3323_p1 }
 0xc2f   :  { %p3326_p4 = pnand %p3325_p3, %p3319_p0 }
 0xc30   :  { %v2361_v30 = vld [vmem:[#allocation2 + $0x8] sm:$0xff] }
 0xc31   :  { %v2362_v19 = vpack.c.bf16 %v2361_v30, %v2360_v40 }
 0xc33   :  { %3179 = vmatmul.mubr.msk.bf16.vlgmr.msra.gmra.mxu0 %vm133_vm0, %v2362_v19 }
 0xc34   :  { %3198 = vmatprep.mubr.msk.bf16.mxu0 %vm3383_vm1, %v3382_v1  ;;  %3195 = vmatpush3.bf16.xpose.msra.mxu0 %v2609_v22 }
 0xc35   :  { %3196 = vmatprep.subr.bf16.mxu0 %v3382_v1  ;;  %v2825_v1 = vld [vmem:[%s4166_s19] ss:$0 sm:$0xff] }
 0xc3c   :  { %3197 = vmatpush3.bf16.xpose.msra.mxu0 %v2606_v13 }
 0xcf3   :  { %v2422_v33 = vpop.f32.mrf.mxu0 }
 0xcf4   :  { %v2423_v35 = vadd.f32 %v2820_v21, %v2422_v33 }
 0xcf5   :  { %v3180_v5 = vpop.f32.mrf.mxu0 }
 0xcf6   :  { %v2439_v36 = vadd.f32 %v2423_v35, %v3851_v58 }
 0xcf7   :  { %v2425_v39 = vpop.f32.mrf.mxu0 }
 0xcf8   :  { %v2426_v41 = vadd.f32 %v2820_v21, %v2425_v39  ;;  %v2443_v43 = vsel %vm133_vm0, %v2439_v36, 0.0 }
 0xcf9   :  { %2444 = vadd.xlane.f32.xlu0 %v2443_v43  ;;  %v3181_v44 = vpop.f32.mrf.mxu0 }
 0xcfa   :  { %v2440_v45 = vadd.f32 %v2426_v41, %v3853_v59 }
 0xcfc   :  { %v2446_v46 = vsel %vm133_vm0, %v2440_v45, 0.0 }
 0xcfd   :  { %2447 = vadd.xlane.f32.xlu1 %v2446_v46 }
 0xd82   :  { %v2445_v58 = vpop.xlane.xlu0 %2444 }
 0xd83   :  { %v2449_v49 = vmul.f32 0.03125, %v2445_v58 }
 0xd85   :  { %v2451_v50 = vsub.f32 %v2439_v36, %v2449_v49 }
 0xd86   :  { %v2448_v51 = vpop.xlane.xlu1 %2447 }
 0xd87   :  { %v2450_v52 = vmul.f32 0.03125, %v2448_v51  ;;  %v2453_v53 = vmul.f32 %v2451_v50, %v2451_v50 }
 0xd89   :  { %v2452_v38 = vsub.f32 %v2440_v45, %v2450_v52  ;;  %v2455_v59 = vsel %vm133_vm0, %v2453_v53, 0.0 }
 0xd8a   :  { %2456 = vadd.xlane.f32.xlu0 %v2455_v59 }
 0xd8b   :  { %v2454_v42 = vmul.f32 %v2452_v38, %v2452_v38 }
 0xd8d   :  { %v2458_v54 = vsel %vm133_vm0, %v2454_v42, 0.0 }
 0xd8e   :  { %2459 = vadd.xlane.f32.xlu0 %v2458_v54 }
 0xe13   :  { %v2457_v24 = vpop.xlane.xlu0 %2456 }
 0xe14   :  { %v2461_v27 = vmul.f32 0.03125, %v2457_v24 }
 0xe16   :  { %v2463_v62 = vadd.f32 1e-06, %v2461_v27 }
 0xe17   :  { %v2460_v63 = vpop.xlane.xlu0 %2459 }
 0xe18   :  { %3310 = vrsqrt.f32 %v2463_v62  ;;  %v2462_v0 = vmul.f32 0.03125, %v2460_v63 }
 0xe1a   :  { %v2464_v2 = vadd.f32 1e-06, %v2462_v0 }
 0xe1c   :  { %3312 = vrsqrt.f32 %v2464_v2 }
 0xe25   :  { %v3311_v3 = vpop.eup %3310 }
 0xe26   :  { %v2467_v4 = vmul.f32 %v3311_v3, %v2451_v50 }
 0xe28   :  { %v2475_v9 = vmul.f32 %v2824_v6, %v2467_v4 }
 0xe29   :  { %v3313_v7 = vpop.eup %3312 }
 0xe2a   :  { %v2468_v8 = vmul.f32 %v3313_v7, %v2452_v38  ;;  %v2483_v12 = vadd.f32 %v2825_v1, %v2475_v9 }
 0xe2c   :  { %v2476_v11 = vmul.f32 %v2824_v6, %v2468_v8 }
 0xe2e   :  { %v2484_v15 = vadd.f32 %v2825_v1, %v2476_v11 }
 0xe30   :  { %v2485_v16 = vpack.c.bf16 %v2484_v15, %v2483_v12 }
 0xe32   :  { %3191 = vmatmul.mubr.msk.bf16.vlgmr.msra.gmra.mxu1 %vm133_vm0, %v2485_v16 }
 0xef2   :  { %v2570_v25 = vpop.f32.mrf.mxu1 }
 0xef3   :  { %v2571_v18 = vadd.f32 %v2826_v14, %v2570_v25 }
 0xef4   :  { %v3192_v32 = vpop.f32.mrf.mxu1 }
 0xef5   :  { %v2577_v26 = vmax.f32 %v2571_v18, 0.0 }
 0xef6   :  { %v2573_v10 = vpop.f32.mrf.mxu1 }
 0xef7   :  { %v2574_v20 = vadd.f32 %v2826_v14, %v2573_v10 }
 0xef8   :  { %v3193_v23 = vpop.f32.mrf.mxu1 }
 0xef9   :  { %v2578_v28 = vmax.f32 %v2574_v20, 0.0 }
 0xefb   :  { %v2579_v37 = vpack.c.bf16 %v2578_v28, %v2577_v26 }
 0xefd   :  { %3199 = vmatmul.mubr.msk.bf16.vlgmr.msra.gmra.mxu0 %vm2601_vm8, %v2579_v37 }
 0xfbd   :  { %v2645_v40 = vpop.f32.mrf.mxu0 }
 0xfbe   :  { %v2646_v30 = vadd.f32 %v2832_v29, %v2645_v40 }
 0xfbf   :  { %v3200_v19 = vpop.f32.mrf.mxu0 }
 0xfc0   :  { %v2652_v21 = vadd.f32 %v2646_v30, %v2483_v12 }
 0xfc1   :  { %v2648_v33 = vpop.f32.mrf.mxu0 }
 0xfc2   :  { %v2649_v35 = vadd.f32 %v2832_v29, %v2648_v33  ;;  %v2656_v5 = vsel %vm133_vm0, %v2652_v21, 0.0 }
 0xfc3   :  { %2657 = vadd.xlane.f32.xlu1 %v2656_v5  ;;  %v3201_v36 = vpop.f32.mrf.mxu0 }
 0xfc4   :  { %v2653_v39 = vadd.f32 %v2649_v35, %v2484_v15 }
 0xfc6   :  { %v2659_v41 = vsel %vm133_vm0, %v2653_v39, 0.0 }
 0xfc7   :  { %2660 = vadd.xlane.f32.xlu0 %v2659_v41 }
0x104c   :  { %v2658_v43 = vpop.xlane.xlu1 %2657 }
0x104d   :  { %v2662_v44 = vmul.f32 0.03125, %v2658_v43 }
0x104f   :  { %v2664_v45 = vsub.f32 %v2652_v21, %v2662_v44 }
0x1050   :  { %v2661_v46 = vpop.xlane.xlu0 %2660 }
0x1051   :  { %v2663_v47 = vmul.f32 0.03125, %v2661_v46  ;;  %v2666_v48 = vmul.f32 %v2664_v45, %v2664_v45 }
0x1053   :  { %v2665_v58 = vsub.f32 %v2653_v39, %v2663_v47  ;;  %v2668_v49 = vsel %vm133_vm0, %v2666_v48, 0.0 }
0x1054   :  { %2669 = vadd.xlane.f32.xlu1 %v2668_v49 }
0x1055   :  { %v2667_v50 = vmul.f32 %v2665_v58, %v2665_v58 }
0x1057   :  { %v2671_v51 = vsel %vm133_vm0, %v2667_v50, 0.0 }
0x1058   :  { %2672 = vadd.xlane.f32.xlu0 %v2671_v51 }
0x1059   :  { %3329 = shalt.err (!%p3326_p4)
}
0x105a   :  { %s3393_s10 = smov 128   ;;  %s3394_s27 = smov [#allocation7]  }
0x105b   :  { %2727 = dma.vmem_to_hbm [thread:$0]  %s2722_s15, 256, %s4170_s23, [#allocation6], %s3393_s10, %s3393_s10, %s3389_s25  }
0x105c   :  { %s2733_s11 = sshll.u32 %s3394_s27, 4  ;;  %s2734_s11 = int_to_ptr.vmem [resolvable:$true] %s2733_s11 }
0x105d   :  { %s3338_s26 = scalar_lea.vmem %s2734_s11, 256  ;;  %p3343_p6 = scmp.lt.s32.totalorder %s2734_s11, %s2734_s11 }
0x105e   :  { %p3339_p5 = scmp.ne.s32.totalorder %s2734_s11, %s3338_s26  ;;  %p3344_p7 = scmp.lt.s32.totalorder %s3338_s26, %s3338_s26 }
0x1060   :  { %p3345_p8 = por %p3344_p7, %p3343_p6 }
0x1062   :  { %p3346_p9 = pnand %p3345_p8, %p3339_p5 }
0x1064   :  { %3349 = shalt.err (!%p3346_p9)
}
0x1065   :  { %2739 = dma.vmem_to_hbm [thread:$0]  %s2734_s11, 256, %s4171_s24, [#allocation6], %s3393_s10, %s3393_s10, %s3389_s25  }
0x1066   :  { %v2836_v56 = vld [vmem:[%s4167_s20] ss:$0 sm:$0xff]  ;;  %s3395_s24 = smov [#allocation3]  }
0x1067   :  { %v2837_v31 = vld [vmem:[%s4168_s21] ss:$0 sm:$0xff]  ;;  %s2709_s9 = sshll.u32 %s3395_s24, 4  ;;  %s2710_s9 = int_to_ptr.vmem [resolvable:$true] %s2709_s9 }
0x1068   :  { %s3358_s12 = scalar_lea.vmem %s2710_s9, 256  ;;  %p3363_p11 = scmp.lt.s32.totalorder %s2710_s9, %s2710_s9 }
0x1069   :  { %p3359_p10 = scmp.ne.s32.totalorder %s2710_s9, %s3358_s12  ;;  %p3364_p12 = scmp.lt.s32.totalorder %s3358_s12, %s3358_s12 }
0x106b   :  { %p3365_p13 = por %p3364_p12, %p3363_p11 }
0x106d   :  { %p3366_p0 = pnand %p3365_p13, %p3359_p10 }
0x10dd   :  { %v2670_v52 = vpop.xlane.xlu1 %2669 }
0x10de   :  { %v2674_v53 = vmul.f32 0.03125, %v2670_v52 }
0x10e0   :  { %v2676_v38 = vadd.f32 1e-06, %v2674_v53 }
0x10e1   :  { %v2673_v59 = vpop.xlane.xlu0 %2672 }
0x10e2   :  { %3314 = vrsqrt.f32 %v2676_v38  ;;  %v2675_v42 = vmul.f32 0.03125, %v2673_v59 }
0x10e4   :  { %v2677_v54 = vadd.f32 1e-06, %v2675_v42 }
0x10e6   :  { %3316 = vrsqrt.f32 %v2677_v54 }
0x10ef   :  { %v3315_v55 = vpop.eup %3314 }
0x10f0   :  { %v2680_v57 = vmul.f32 %v3315_v55, %v2664_v45 }
0x10f2   :  { %v2688_v34 = vmul.f32 %v2836_v56, %v2680_v57 }
0x10f3   :  { %v3317_v60 = vpop.eup %3316 }
0x10f4   :  { %v2681_v61 = vmul.f32 %v3317_v60, %v2665_v58  ;;  %v2696_v22 = vadd.f32 %v2837_v31, %v2688_v34 }
0x10f6   :  { %v2689_v24 = vmul.f32 %v2836_v56, %v2681_v61  ;;  %2698 = vst.msk [vmem:[#allocation3] sm:$0xff] %vm133_vm0, %v2696_v22 }
0x10f8   :  { %v2697_v27 = vadd.f32 %v2837_v31, %v2689_v24 }
0x10fa   :  { %2699 = vst.msk [vmem:[#allocation3 + $0x8] sm:$0xff] %vm133_vm0, %v2697_v27 }
0x10fb   :  { %3369 = shalt.err (!%p3366_p0)
}
0x10fc   :  { %2715 = dma.vmem_to_hbm [thread:$0]  %s2710_s9, 256, %s4169_s22, [#allocation4], %s3393_s10, %s3393_s10, %s3389_s25  }
0x10fd   :  { %3378 = dma.done.wait [#allocation4], 256  }
0x10fe   :  { %3379 = vsyncadd [#allocation4], 4294967040 }
0x10ff   :  { %3380 = dma.done.wait [#allocation6], 512  }
0x1100   :  { %3381 = vsyncadd [#allocation6], 4294966784 }
0x1101   :  { %2749 = vsyncpa [#allocation4], 1 }
0x1102   :  { %2750 = vsyncpa [#allocation6], 1 }

</bundles_post_ra>
